<compile_context>
chip_gen: v7x
topology: tpu7x:2x2x1
jax: 0.10.0
libtpu: 0.0.40
codegen_flags: <defaults>
</compile_context>

<pallas_src>
from functools import partial

import jax
import jax.numpy as jnp
from jax.experimental import pallas as pl
from jax.experimental.pallas import tpu as pltpu


_VMEM_LIMIT = 32 * 1024 * 1024           # explicit scoped-VMEM limit (safe on v5e/v6e/v7x)
_MATMUL_VMEM_BUDGET = 24 * 1024 * 1024   # target for the double-buffered working set


def _round_up(x, m):
    return (x + m - 1) // m * m


# ---------------------------------------------------------------------------
# Generic parallel row-tiled matmul (+ optional bias): (R,K) @ (K,N) [+b] -> (R,N)
# Used for (a) the hoisted input->gate matmul and (b) the tied vocab projection.
# ---------------------------------------------------------------------------
def _matmul_bias_kernel(x_ref, w_ref, b_ref, o_ref):
    acc = jnp.dot(x_ref[...], w_ref[...], preferred_element_type=jnp.float32)
    o_ref[...] = (acc + b_ref[...]).astype(o_ref.dtype)


def _matmul_kernel(x_ref, w_ref, o_ref):
    o_ref[...] = jnp.dot(x_ref[...], w_ref[...],
                         preferred_element_type=jnp.float32).astype(o_ref.dtype)


def row_tiled_matmul(x, w, bias=None, out_dtype=jnp.float32):
    """x: (R, K), w: (K, N), optional bias: (N,).  N must be a multiple of 128."""
    R, K = x.shape
    K2, N = w.shape
    assert K == K2 and N % 128 == 0

    # Row tile: prefer 512/256 (fills the 2x256 MXU rows on v6e/v7x and cuts the
    # per-row-tile weight re-streaming 2-4x vs 128); small R -> sublane-padded.
    if R >= 512:
        tm = 512
    elif R >= 256:
        tm = 256
    elif R >= 128:
        tm = 128
    else:
        tm = _round_up(R, 8)

    # Lane tile: biggest of {512, 256, 128} that divides N...
    tn = 512 if N % 512 == 0 else (256 if N % 256 == 0 else 128)

    # ...then shrink until the double-buffered working set fits a conservative
    # VMEM budget (v5e scoped default is 16 MiB; v7x has 64 MiB physical).
    out_isz = jnp.dtype(out_dtype).itemsize

    def _footprint(tm_, tn_):
        return 2 * (tm_ * K * x.dtype.itemsize
                    + K * tn_ * w.dtype.itemsize
                    + tm_ * tn_ * out_isz)

    while tn > 128 and _footprint(tm, tn) > _MATMUL_VMEM_BUDGET:
        tn //= 2
    while tm > 128 and _footprint(tm, tn) > _MATMUL_VMEM_BUDGET:
        tm //= 2

    Rp = _round_up(R, tm)
    if Rp != R:
        x = jnp.pad(x, ((0, Rp - R), (0, 0)))

    cparams = pltpu.CompilerParams(
        dimension_semantics=("parallel", "parallel"),
        vmem_limit_bytes=_VMEM_LIMIT)

    if bias is None:
        out = pl.pallas_call(
            _matmul_kernel,
            out_shape=jax.ShapeDtypeStruct((Rp, N), out_dtype),
            grid=(Rp // tm, N // tn),
            in_specs=[
                pl.BlockSpec((tm, K), lambda i, j: (i, 0)),   # activations
                pl.BlockSpec((K, tn), lambda i, j: (0, j)),   # weights
            ],
            out_specs=pl.BlockSpec((tm, tn), lambda i, j: (i, j)),
            compiler_params=cparams,
        )(x, w)
    else:
        b2 = bias.reshape(1, N).astype(jnp.float32)
        out = pl.pallas_call(
            _matmul_bias_kernel,
            out_shape=jax.ShapeDtypeStruct((Rp, N), out_dtype),
            grid=(Rp // tm, N // tn),
            in_specs=[
                pl.BlockSpec((tm, K), lambda i, j: (i, 0)),   # activations
                pl.BlockSpec((K, tn), lambda i, j: (0, j)),   # weights
                pl.BlockSpec((1, tn), lambda i, j: (0, j)),   # bias
            ],
            out_specs=pl.BlockSpec((tm, tn), lambda i, j: (i, j)),
            compiler_params=cparams,
        )(x, w, b2)
    return out[:R]


# ---------------------------------------------------------------------------
# Sequential LSTM recurrence, time-chunked.  One grid step == Tc timesteps.
# Only the unavoidable serial work lives here: h@Wh, gate nonlinearities, state
# update.  h/c persist in VMEM scratch across the (serial) time axis; the
# leading batch-tile axis is "parallel" (megacore-shardable on v7x).
# ---------------------------------------------------------------------------
def _make_lstm_recurrence_kernel(Hp, Tc):
    G = 4 * Hp

    def kernel(gx_ref, wh_ref, hseq_ref, h_ref, c_ref):
        """
        gx_ref:   (Bb, Tc*4*Hp)  precomputed x_t @ Wx + bias for the chunk
        wh_ref:   (Hp, 4*Hp)     hidden->gate weights, gate blocks lane-aligned
        hseq_ref: (Bb, Tc*Hp)    h_t output slab for the chunk
        h_ref:    (Bb, Hp)       VMEM scratch, f32, persists across grid steps
        c_ref:    (Bb, Hp)       VMEM scratch, f32, persists across grid steps
        """
        # Reset the recurrent state at the first time-chunk of each batch tile.
        @pl.when(pl.program_id(1) == 0)
        def _():
            h_ref[...] = jnp.zeros_like(h_ref)
            c_ref[...] = jnp.zeros_like(c_ref)

        h = h_ref[...]
        c = c_ref[...]
        wh = wh_ref[...]

        # Statically unrolled chunk: every slice is a lane-aligned constant.
        for s in range(Tc):
            gx = gx_ref[:, s * G:(s + 1) * G].astype(jnp.float32)
            gates = gx + jnp.dot(h.astype(wh.dtype), wh,
                                 preferred_element_type=jnp.float32)
            # Single fused sigmoid over the full (Bb, 4*Hp) block, then slice.
            sg = jax.nn.sigmoid(gates)
            f_t = sg[:, 0 * Hp:1 * Hp]
            i_t = sg[:, 1 * Hp:2 * Hp]
            o_t = sg[:, 2 * Hp:3 * Hp]
            g_t = sg[:, 3 * Hp:4 * Hp]   # sigmoid (matches the reference LSTM)
            c = f_t * c + i_t * g_t
            h = o_t * jnp.tanh(c)
            hseq_ref[:, s * Hp:(s + 1) * Hp] = h.astype(hseq_ref.dtype)
            # Padded Hp lanes of h carry sigmoid(0)-driven garbage; this is
            # harmless because the padded rows of Wh / Wout are zero (invariant
            # kept by prepare_params) and the padded logits are sliced off.

        h_ref[...] = h
        c_ref[...] = c

    return kernel


# ---------------------------------------------------------------------------
# One-time weight preparation (hoisted out of the per-call forward).
# ---------------------------------------------------------------------------
def prepare_params(emb_weight, wx_T, wh_T, bias, compute_dtype=jnp.bfloat16):
    """
    emb_weight: (V, E) f32
    wx_T:       (E, 4H) f32   stacked [Wf|Wi|Wo|Wg].T
    wh_T:       (H, 4H) f32   stacked [Uf|Ui|Uo|Ug].T
    bias:       (4H,)   f32   summed W-bias + U-bias per gate
    """
    V, E = emb_weight.shape
    H = wh_T.shape[0]
    assert wx_T.shape == (E, 4 * H) and bias.shape == (4 * H,)
    assert E == H, "tied projection (rnn_out @ emb.weight.T) requires hidden == emb dim"

    Hp = _round_up(H, 128)    # lane padding -> lane-aligned gate slices
    Vp = _round_up(V, 128)

    # Re-stack gate weights so each gate occupies its own lane-aligned Hp block.
    # Padded rows/cols are ZERO so padded h lanes never contaminate real lanes.
    wx_p = jnp.zeros((E, 4 * Hp), jnp.float32)
    wh_p = jnp.zeros((Hp, 4 * Hp), jnp.float32)
    b_p = jnp.zeros((4 * Hp,), jnp.float32)
    for g in range(4):
        wx_p = wx_p.at[:, g * Hp:g * Hp + H].set(wx_T[:, g * H:(g + 1) * H])
        wh_p = wh_p.at[:H, g * Hp:g * Hp + H].set(wh_T[:, g * H:(g + 1) * H])
        b_p = b_p.at[g * Hp:g * Hp + H].set(bias[g * H:(g + 1) * H])
    wout_p = jnp.zeros((Hp, Vp), jnp.float32).at[:H, :V].set(emb_weight.T)

    return dict(
        emb=emb_weight.astype(jnp.float32),     # (V, E)   gather table
        wx=wx_p.astype(compute_dtype),          # (E, 4*Hp)
        wh=wh_p.astype(compute_dtype),          # (Hp, 4*Hp)
        b=b_p,                                  # (4*Hp,)  f32
        wout=wout_p.astype(compute_dtype),      # (Hp, Vp)
    )


# ---------------------------------------------------------------------------
# Full Model.forward
# ---------------------------------------------------------------------------
@partial(jax.jit, static_argnames=("compute_dtype",))
def model_forward(batch_input_ids, params, compute_dtype=jnp.bfloat16):
    """batch_input_ids: (B, L) int32;  returns (B, L, V) f32 logits."""
    emb = params["emb"]
    wx_p, wh_p, b_p, wout_p = params["wx"], params["wh"], params["b"], params["wout"]

    B, L = batch_input_ids.shape
    V, E = emb.shape
    Hp = wh_p.shape[0]
    Vp = wout_p.shape[1]

    Bp = _round_up(B, 8)                                  # sublane padding
    Tc = 32 if L >= 32 else (16 if L >= 16 else 8)        # time-chunk size
    Lp = _round_up(L, Tc)

    # v7x megacore: split the batch across the 2 TensorCores when big enough.
    nb = 2 if (Bp % 16 == 0) else 1
    Bb = Bp // nb

    # --- embedding gather (plain-JAX glue), batch-major, padded batch/time.
    ids_p = jnp.pad(batch_input_ids, ((0, Bp - B), (0, Lp - L)))     # (Bp, Lp)
    x = jnp.take(emb, ids_p, axis=0).astype(compute_dtype)          # (Bp, Lp, E)

    # --- stage 1 (parallel): hoisted input->gate matmul, bias folded in.
    #     bf16 output halves the HBM round-trip that stage 2 re-reads.
    gates_x = row_tiled_matmul(x.reshape(Bp * Lp, E), wx_p, b_p,
                               out_dtype=compute_dtype)              # (Bp*Lp, 4Hp)
    gates_x = gates_x.reshape(Bp, Lp * 4 * Hp)                       # contiguous

    # --- stage 2 (serial over time): time-chunked recurrence, h/c in VMEM.
    wh_dbl_buf_bytes = 2 * wh_p.size * wh_p.dtype.itemsize
    if wh_dbl_buf_bytes > (8 << 20):
        # Single-buffer the resident Wh block (constant index map) so large-H
        # cases do not burn 2x its size out of v7x's 64 MiB VMEM.
        wh_spec = pl.BlockSpec((Hp, 4 * Hp), lambda b, t: (0, 0),
                               pipeline_mode=pl.Buffered(1))
    else:
        wh_spec = pl.BlockSpec((Hp, 4 * Hp), lambda b, t: (0, 0))

    h_seq = pl.pallas_call(
        _make_lstm_recurrence_kernel(Hp, Tc),
        out_shape=jax.ShapeDtypeStruct((Bp, Lp * Hp), compute_dtype),
        grid=(nb, Lp // Tc),
        in_specs=[
            pl.BlockSpec((Bb, Tc * 4 * Hp), lambda b, t: (b, t)),   # gx chunk
            wh_spec,                                                # Wh (resident)
        ],
        out_specs=pl.BlockSpec((Bb, Tc * Hp), lambda b, t: (b, t)),
        scratch_shapes=[
            pltpu.VMEM((Bb, Hp), jnp.float32),   # h state
            pltpu.VMEM((Bb, Hp), jnp.float32),   # c state
        ],
        compiler_params=pltpu.CompilerParams(
            dimension_semantics=("parallel", "arbitrary"),   # batch x time(serial)
            vmem_limit_bytes=_VMEM_LIMIT),
    )(gates_x, wh_p)

    # --- stage 3 (parallel): tied vocab projection (bias-free), batched over B*L.
    h2d = h_seq.reshape(Bp * Lp, Hp)                                 # contiguous
    logits = row_tiled_matmul(h2d, wout_p, bias=None, out_dtype=jnp.float32)
    return logits.reshape(Bp, Lp, Vp)[:B, :L, :V]                    # (B, L, V)


# ---------------------------------------------------------------------------
# Pure-JAX reference mirroring the PyTorch module exactly (f32).
# ---------------------------------------------------------------------------
def reference_forward(batch_input_ids, emb_weight, wx_T, wh_T, bias):
    B, L = batch_input_ids.shape
    H = wh_T.shape[0]
    input_emb = jnp.take(emb_weight, batch_input_ids, axis=0)        # (B, L, E)

    h = jnp.zeros((B, H), jnp.float32)
    c = jnp.zeros((B, H), jnp.float32)
    outs = []
    for t in range(L):
        x_t = input_emb[:, t, :]
        gates = x_t @ wx_T + h @ wh_T + bias
        f_t = jax.nn.sigmoid(gates[:, 0 * H:1 * H])
        i_t = jax.nn.sigmoid(gates[:, 1 * H:2 * H])
        o_t = jax.nn.sigmoid(gates[:, 2 * H:3 * H])
        g_t = jax.nn.sigmoid(gates[:, 3 * H:4 * H])   # sigmoid per reference
        c = f_t * c + i_t * g_t
        h = o_t * jnp.tanh(c)
        outs.append(h)
    rnn_out = jnp.stack(outs, axis=1)                                # (B, L, H)
    return rnn_out @ emb_weight.T                                    # (B, L, V)


if __name__ == "__main__":
    # Small shapes; hidden_size == input_emb_dim as the tied projection implies.
    B, L = 2, 8
    E = H = 32
    V = 64

    key = jax.random.PRNGKey(0)
    k_emb, k_wx, k_wh, k_bx, k_bh, k_ids = jax.random.split(key, 6)

    emb_weight = 0.1 * jax.random.normal(k_emb, (V, E), jnp.float32)
    wx_T = 0.1 * jax.random.normal(k_wx, (E, 4 * H), jnp.float32)
    wh_T = 0.1 * jax.random.normal(k_wh, (H, 4 * H), jnp.float32)
    bias = (0.1 * jax.random.normal(k_bx, (4 * H,), jnp.float32)
            + 0.1 * jax.random.normal(k_bh, (4 * H,), jnp.float32))
    batch_input_ids = jax.random.randint(k_ids, (B, L), 0, V, jnp.int32)

    ref = reference_forward(batch_input_ids, emb_weight, wx_T, wh_T, bias)

    # f32 compute path: tight structural check of the kernels.
    params_f32 = prepare_params(emb_weight, wx_T, wh_T, bias, jnp.float32)
    out_f32 = jax.block_until_ready(
        model_forward(batch_input_ids, params_f32, compute_dtype=jnp.float32))
    assert out_f32.shape == (B, L, V), out_f32.shape
    assert jnp.allclose(out_f32, ref, atol=1e-4, rtol=1e-4), (
        float(jnp.max(jnp.abs(out_f32 - ref))))

    # bf16 compute path (performance default): loose tolerance vs f32 reference.
    # TODO(synk): re-validate the bf16 tolerance at production sequence lengths
    # (recurrence error compounds with L).
    params_bf16 = prepare_params(emb_weight, wx_T, wh_T, bias, jnp.bfloat16)
    out_bf16 = jax.block_until_ready(model_forward(batch_input_ids, params_bf16))
    assert out_bf16.shape == (B, L, V), out_bf16.shape
    assert jnp.allclose(out_bf16, ref, atol=5e-2, rtol=5e-2), (
        float(jnp.max(jnp.abs(out_bf16 - ref))))

    print("KERNEL_OK")
</pallas_src>

<mosaic_0001>
module attributes {stable_mosaic.version = 11 : i64} {
  func.func @kernel(%arg0: i32, %arg1: i32, %arg2: memref<8x4096xf32, #tpu.memory_space<vmem>>, %arg3: memref<128x512xf32, #tpu.memory_space<vmem>>, %arg4: memref<8x1024xf32, #tpu.memory_space<vmem>>, %arg5: memref<8x128xf32, #tpu.memory_space<vmem>>, %arg6: memref<8x128xf32, #tpu.memory_space<vmem>>) attributes {dimension_semantics = [#tpu.dimension_semantics<parallel>, #tpu.dimension_semantics<arbitrary>], iteration_bounds = array<i64: 1, 1>, scalar_prefetch = 0 : i64, scratch_operands = 2 : i64, tpu.core_type = #tpu.core_type<tc>, window_params = [{transform_indices = @transform_0, window_bounds = array<i64: 8, 4096>}, {pipeline_mode = #tpu.pipeline_mode<synchronous>, transform_indices = @transform_1, window_bounds = array<i64: 128, 512>}, {transform_indices = @transform_2, window_bounds = array<i64: 8, 1024>}]} {
    %c0_i32 = arith.constant 0 : i32
    %0 = arith.cmpi eq, %arg1, %c0_i32 : i32
    %1 = arith.extui %0 : i1 to i32
    %c0_i32_0 = arith.constant 0 : i32
    %2 = arith.cmpi ne, %1, %c0_i32_0 : i32
    scf.if %2 {
      %cst_44 = arith.constant 0.000000e+00 : f32
      %152 = vector.broadcast %cst_44 : f32 to vector<8x128xf32>
      %c0_45 = arith.constant 0 : index
      %c0_46 = arith.constant 0 : index
      %153 = vector.load %arg5[%c0_45, %c0_46] : memref<8x128xf32, #tpu.memory_space<vmem>>, vector<8x128xf32>
      tpu.vector_store %arg5[%c0_45, %c0_46], %152 {strides = array<i32>} : memref<8x128xf32, #tpu.memory_space<vmem>>, vector<8x128xf32>,
      %cst_47 = arith.constant 0.000000e+00 : f32
      %154 = vector.broadcast %cst_47 : f32 to vector<8x128xf32>
      %c0_48 = arith.constant 0 : index
      %c0_49 = arith.constant 0 : index
      %155 = vector.load %arg6[%c0_48, %c0_49] : memref<8x128xf32, #tpu.memory_space<vmem>>, vector<8x128xf32>
      tpu.vector_store %arg6[%c0_48, %c0_49], %154 {strides = array<i32>} : memref<8x128xf32, #tpu.memory_space<vmem>>, vector<8x128xf32>,
    } else {
    }
    %c0 = arith.constant 0 : index
    %c0_1 = arith.constant 0 : index
    %3 = vector.load %arg5[%c0, %c0_1] : memref<8x128xf32, #tpu.memory_space<vmem>>, vector<8x128xf32>
    %c0_2 = arith.constant 0 : index
    %c0_3 = arith.constant 0 : index
    %4 = vector.load %arg6[%c0_2, %c0_3] : memref<8x128xf32, #tpu.memory_space<vmem>>, vector<8x128xf32>
    %c0_4 = arith.constant 0 : index
    %c0_5 = arith.constant 0 : index
    %5 = vector.load %arg3[%c0_4, %c0_5] : memref<128x512xf32, #tpu.memory_space<vmem>>, vector<128x512xf32>
    %c0_6 = arith.constant 0 : index
    %c0_7 = arith.constant 0 : index
    %6 = vector.load %arg2[%c0_6, %c0_7] : memref<8x4096xf32, #tpu.memory_space<vmem>>, vector<8x512xf32>
    %cst = arith.constant dense<0.000000e+00> : vector<8x512xf32>
    %7 = tpu.matmul %3, %5, %cst {dimension_numbers = #tpu.dot_dimension_numbers<[1], [0], [0], [1], [0, 0, 1, 1], [], []>} : vector<8x128xf32>, vector<128x512xf32>, vector<8x512xf32> -> vector<8x512xf32>
    %8 = arith.addf %6, %7 : vector<8x512xf32>
    %9 = arith.negf %8 : vector<8x512xf32>
    %10 = math.exp %9 : vector<8x512xf32>
    %cst_8 = arith.constant 1.000000e+00 : f32
    %11 = vector.broadcast %cst_8 : f32 to vector<8x512xf32>
    %12 = arith.addf %11, %10 : vector<8x512xf32>
    %13 = arith.divf %11, %12 : vector<8x512xf32>
    %14 = vector.extract_strided_slice %13 {offsets = [0, 0], sizes = [8, 128], strides = [1, 1]} : vector<8x512xf32> to vector<8x128xf32>
    %15 = vector.extract_strided_slice %13 {offsets = [0, 128], sizes = [8, 128], strides = [1, 1]} : vector<8x512xf32> to vector<8x128xf32>
    %16 = vector.extract_strided_slice %13 {offsets = [0, 256], sizes = [8, 128], strides = [1, 1]} : vector<8x512xf32> to vector<8x128xf32>
    %17 = vector.extract_strided_slice %13 {offsets = [0, 384], sizes = [8, 128], strides = [1, 1]} : vector<8x512xf32> to vector<8x128xf32>
    %18 = arith.mulf %14, %4 : vector<8x128xf32>
    %19 = arith.mulf %15, %17 : vector<8x128xf32>
    %20 = arith.addf %18, %19 : vector<8x128xf32>
    %21 = math.tanh %20 : vector<8x128xf32>
    %22 = arith.mulf %16, %21 : vector<8x128xf32>
    %c0_9 = arith.constant 0 : index
    %c0_10 = arith.constant 0 : index
    %23 = vector.load %arg4[%c0_9, %c0_10] : memref<8x1024xf32, #tpu.memory_space<vmem>>, vector<8x128xf32>
    tpu.vector_store %arg4[%c0_9, %c0_10], %22 {strides = array<i32>} : memref<8x1024xf32, #tpu.memory_space<vmem>>, vector<8x128xf32>,
    %c0_11 = arith.constant 0 : index
    %c512 = arith.constant 512 : index
    %24 = vector.load %arg2[%c0_11, %c512] : memref<8x4096xf32, #tpu.memory_space<vmem>>, vector<8x512xf32>
    %cst_12 = arith.constant dense<0.000000e+00> : vector<8x512xf32>
    %25 = tpu.matmul %22, %5, %cst_12 {dimension_numbers = #tpu.dot_dimension_numbers<[1], [0], [0], [1], [0, 0, 1, 1], [], []>} : vector<8x128xf32>, vector<128x512xf32>, vector<8x512xf32> -> vector<8x512xf32>
    %26 = arith.addf %24, %25 : vector<8x512xf32>
    %27 = arith.negf %26 : vector<8x512xf32>
    %28 = math.exp %27 : vector<8x512xf32>
    %cst_13 = arith.constant 1.000000e+00 : f32
    %29 = vector.broadcast %cst_13 : f32 to vector<8x512xf32>
    %30 = arith.addf %29, %28 : vector<8x512xf32>
    %31 = arith.divf %29, %30 : vector<8x512xf32>
    %32 = vector.extract_strided_slice %31 {offsets = [0, 0], sizes = [8, 128], strides = [1, 1]} : vector<8x512xf32> to vector<8x128xf32>
    %33 = vector.extract_strided_slice %31 {offsets = [0, 128], sizes = [8, 128], strides = [1, 1]} : vector<8x512xf32> to vector<8x128xf32>
    %34 = vector.extract_strided_slice %31 {offsets = [0, 256], sizes = [8, 128], strides = [1, 1]} : vector<8x512xf32> to vector<8x128xf32>
    %35 = vector.extract_strided_slice %31 {offsets = [0, 384], sizes = [8, 128], strides = [1, 1]} : vector<8x512xf32> to vector<8x128xf32>
    %36 = arith.mulf %32, %20 : vector<8x128xf32>
    %37 = arith.mulf %33, %35 : vector<8x128xf32>
    %38 = arith.addf %36, %37 : vector<8x128xf32>
    %39 = math.tanh %38 : vector<8x128xf32>
    %40 = arith.mulf %34, %39 : vector<8x128xf32>
    %c0_14 = arith.constant 0 : index
    %c128 = arith.constant 128 : index
    %41 = vector.load %arg4[%c0_14, %c128] : memref<8x1024xf32, #tpu.memory_space<vmem>>, vector<8x128xf32>
    tpu.vector_store %arg4[%c0_14, %c128], %40 {strides = array<i32>} : memref<8x1024xf32, #tpu.memory_space<vmem>>, vector<8x128xf32>,
    %c0_15 = arith.constant 0 : index
    %c1024 = arith.constant 1024 : index
    %42 = vector.load %arg2[%c0_15, %c1024] : memref<8x4096xf32, #tpu.memory_space<vmem>>, vector<8x512xf32>
    %cst_16 = arith.constant dense<0.000000e+00> : vector<8x512xf32>
    %43 = tpu.matmul %40, %5, %cst_16 {dimension_numbers = #tpu.dot_dimension_numbers<[1], [0], [0], [1], [0, 0, 1, 1], [], []>} : vector<8x128xf32>, vector<128x512xf32>, vector<8x512xf32> -> vector<8x512xf32>
    %44 = arith.addf %42, %43 : vector<8x512xf32>
    %45 = arith.negf %44 : vector<8x512xf32>
    %46 = math.exp %45 : vector<8x512xf32>
    %cst_17 = arith.constant 1.000000e+00 : f32
    %47 = vector.broadcast %cst_17 : f32 to vector<8x512xf32>
    %48 = arith.addf %47, %46 : vector<8x512xf32>
    %49 = arith.divf %47, %48 : vector<8x512xf32>
    %50 = vector.extract_strided_slice %49 {offsets = [0, 0], sizes = [8, 128], strides = [1, 1]} : vector<8x512xf32> to vector<8x128xf32>
    %51 = vector.extract_strided_slice %49 {offsets = [0, 128], sizes = [8, 128], strides = [1, 1]} : vector<8x512xf32> to vector<8x128xf32>
    %52 = vector.extract_strided_slice %49 {offsets = [0, 256], sizes = [8, 128], strides = [1, 1]} : vector<8x512xf32> to vector<8x128xf32>
    %53 = vector.extract_strided_slice %49 {offsets = [0, 384], sizes = [8, 128], strides = [1, 1]} : vector<8x512xf32> to vector<8x128xf32>
    %54 = arith.mulf %50, %38 : vector<8x128xf32>
    %55 = arith.mulf %51, %53 : vector<8x128xf32>
    %56 = arith.addf %54, %55 : vector<8x128xf32>
    %57 = math.tanh %56 : vector<8x128xf32>
    %58 = arith.mulf %52, %57 : vector<8x128xf32>
    %c0_18 = arith.constant 0 : index
    %c256 = arith.constant 256 : index
    %59 = vector.load %arg4[%c0_18, %c256] : memref<8x1024xf32, #tpu.memory_space<vmem>>, vector<8x128xf32>
    tpu.vector_store %arg4[%c0_18, %c256], %58 {strides = array<i32>} : memref<8x1024xf32, #tpu.memory_space<vmem>>, vector<8x128xf32>,
    %c0_19 = arith.constant 0 : index
    %c1536 = arith.constant 1536 : index
    %60 = vector.load %arg2[%c0_19, %c1536] : memref<8x4096xf32, #tpu.memory_space<vmem>>, vector<8x512xf32>
    %cst_20 = arith.constant dense<0.000000e+00> : vector<8x512xf32>
    %61 = tpu.matmul %58, %5, %cst_20 {dimension_numbers = #tpu.dot_dimension_numbers<[1], [0], [0], [1], [0, 0, 1, 1], [], []>} : vector<8x128xf32>, vector<128x512xf32>, vector<8x512xf32> -> vector<8x512xf32>
    %62 = arith.addf %60, %61 : vector<8x512xf32>
    %63 = arith.negf %62 : vector<8x512xf32>
    %64 = math.exp %63 : vector<8x512xf32>
    %cst_21 = arith.constant 1.000000e+00 : f32
    %65 = vector.broadcast %cst_21 : f32 to vector<8x512xf32>
    %66 = arith.addf %65, %64 : vector<8x512xf32>
    %67 = arith.divf %65, %66 : vector<8x512xf32>
    %68 = vector.extract_strided_slice %67 {offsets = [0, 0], sizes = [8, 128], strides = [1, 1]} : vector<8x512xf32> to vector<8x128xf32>
    %69 = vector.extract_strided_slice %67 {offsets = [0, 128], sizes = [8, 128], strides = [1, 1]} : vector<8x512xf32> to vector<8x128xf32>
    %70 = vector.extract_strided_slice %67 {offsets = [0, 256], sizes = [8, 128], strides = [1, 1]} : vector<8x512xf32> to vector<8x128xf32>
    %71 = vector.extract_strided_slice %67 {offsets = [0, 384], sizes = [8, 128], strides = [1, 1]} : vector<8x512xf32> to vector<8x128xf32>
    %72 = arith.mulf %68, %56 : vector<8x128xf32>
    %73 = arith.mulf %69, %71 : vector<8x128xf32>
    %74 = arith.addf %72, %73 : vector<8x128xf32>
    %75 = math.tanh %74 : vector<8x128xf32>
    %76 = arith.mulf %70, %75 : vector<8x128xf32>
    %c0_22 = arith.constant 0 : index
    %c384 = arith.constant 384 : index
    %77 = vector.load %arg4[%c0_22, %c384] : memref<8x1024xf32, #tpu.memory_space<vmem>>, vector<8x128xf32>
    tpu.vector_store %arg4[%c0_22, %c384], %76 {strides = array<i32>} : memref<8x1024xf32, #tpu.memory_space<vmem>>, vector<8x128xf32>,
    %c0_23 = arith.constant 0 : index
    %c2048 = arith.constant 2048 : index
    %78 = vector.load %arg2[%c0_23, %c2048] : memref<8x4096xf32, #tpu.memory_space<vmem>>, vector<8x512xf32>
    %cst_24 = arith.constant dense<0.000000e+00> : vector<8x512xf32>
    %79 = tpu.matmul %76, %5, %cst_24 {dimension_numbers = #tpu.dot_dimension_numbers<[1], [0], [0], [1], [0, 0, 1, 1], [], []>} : vector<8x128xf32>, vector<128x512xf32>, vector<8x512xf32> -> vector<8x512xf32>
    %80 = arith.addf %78, %79 : vector<8x512xf32>
    %81 = arith.negf %80 : vector<8x512xf32>
    %82 = math.exp %81 : vector<8x512xf32>
    %cst_25 = arith.constant 1.000000e+00 : f32
    %83 = vector.broadcast %cst_25 : f32 to vector<8x512xf32>
    %84 = arith.addf %83, %82 : vector<8x512xf32>
    %85 = arith.divf %83, %84 : vector<8x512xf32>
    %86 = vector.extract_strided_slice %85 {offsets = [0, 0], sizes = [8, 128], strides = [1, 1]} : vector<8x512xf32> to vector<8x128xf32>
    %87 = vector.extract_strided_slice %85 {offsets = [0, 128], sizes = [8, 128], strides = [1, 1]} : vector<8x512xf32> to vector<8x128xf32>
    %88 = vector.extract_strided_slice %85 {offsets = [0, 256], sizes = [8, 128], strides = [1, 1]} : vector<8x512xf32> to vector<8x128xf32>
    %89 = vector.extract_strided_slice %85 {offsets = [0, 384], sizes = [8, 128], strides = [1, 1]} : vector<8x512xf32> to vector<8x128xf32>
    %90 = arith.mulf %86, %74 : vector<8x128xf32>
    %91 = arith.mulf %87, %89 : vector<8x128xf32>
    %92 = arith.addf %90, %91 : vector<8x128xf32>
    %93 = math.tanh %92 : vector<8x128xf32>
    %94 = arith.mulf %88, %93 : vector<8x128xf32>
    %c0_26 = arith.constant 0 : index
    %c512_27 = arith.constant 512 : index
    %95 = vector.load %arg4[%c0_26, %c512_27] : memref<8x1024xf32, #tpu.memory_space<vmem>>, vector<8x128xf32>
    tpu.vector_store %arg4[%c0_26, %c512_27], %94 {strides = array<i32>} : memref<8x1024xf32, #tpu.memory_space<vmem>>, vector<8x128xf32>,
    %c0_28 = arith.constant 0 : index
    %c2560 = arith.constant 2560 : index
    %96 = vector.load %arg2[%c0_28, %c2560] : memref<8x4096xf32, #tpu.memory_space<vmem>>, vector<8x512xf32>
    %cst_29 = arith.constant dense<0.000000e+00> : vector<8x512xf32>
    %97 = tpu.matmul %94, %5, %cst_29 {dimension_numbers = #tpu.dot_dimension_numbers<[1], [0], [0], [1], [0, 0, 1, 1], [], []>} : vector<8x128xf32>, vector<128x512xf32>, vector<8x512xf32> -> vector<8x512xf32>
    %98 = arith.addf %96, %97 : vector<8x512xf32>
    %99 = arith.negf %98 : vector<8x512xf32>
    %100 = math.exp %99 : vector<8x512xf32>
    %cst_30 = arith.constant 1.000000e+00 : f32
    %101 = vector.broadcast %cst_30 : f32 to vector<8x512xf32>
    %102 = arith.addf %101, %100 : vector<8x512xf32>
    %103 = arith.divf %101, %102 : vector<8x512xf32>
    %104 = vector.extract_strided_slice %103 {offsets = [0, 0], sizes = [8, 128], strides = [1, 1]} : vector<8x512xf32> to vector<8x128xf32>
    %105 = vector.extract_strided_slice %103 {offsets = [0, 128], sizes = [8, 128], strides = [1, 1]} : vector<8x512xf32> to vector<8x128xf32>
    %106 = vector.extract_strided_slice %103 {offsets = [0, 256], sizes = [8, 128], strides = [1, 1]} : vector<8x512xf32> to vector<8x128xf32>
    %107 = vector.extract_strided_slice %103 {offsets = [0, 384], sizes = [8, 128], strides = [1, 1]} : vector<8x512xf32> to vector<8x128xf32>
    %108 = arith.mulf %104, %92 : vector<8x128xf32>
    %109 = arith.mulf %105, %107 : vector<8x128xf32>
    %110 = arith.addf %108, %109 : vector<8x128xf32>
    %111 = math.tanh %110 : vector<8x128xf32>
    %112 = arith.mulf %106, %111 : vector<8x128xf32>
    %c0_31 = arith.constant 0 : index
    %c640 = arith.constant 640 : index
    %113 = vector.load %arg4[%c0_31, %c640] : memref<8x1024xf32, #tpu.memory_space<vmem>>, vector<8x128xf32>
    tpu.vector_store %arg4[%c0_31, %c640], %112 {strides = array<i32>} : memref<8x1024xf32, #tpu.memory_space<vmem>>, vector<8x128xf32>,
    %c0_32 = arith.constant 0 : index
    %c3072 = arith.constant 3072 : index
    %114 = vector.load %arg2[%c0_32, %c3072] : memref<8x4096xf32, #tpu.memory_space<vmem>>, vector<8x512xf32>
    %cst_33 = arith.constant dense<0.000000e+00> : vector<8x512xf32>
    %115 = tpu.matmul %112, %5, %cst_33 {dimension_numbers = #tpu.dot_dimension_numbers<[1], [0], [0], [1], [0, 0, 1, 1], [], []>} : vector<8x128xf32>, vector<128x512xf32>, vector<8x512xf32> -> vector<8x512xf32>
    %116 = arith.addf %114, %115 : vector<8x512xf32>
    %117 = arith.negf %116 : vector<8x512xf32>
    %118 = math.exp %117 : vector<8x512xf32>
    %cst_34 = arith.constant 1.000000e+00 : f32
    %119 = vector.broadcast %cst_34 : f32 to vector<8x512xf32>
    %120 = arith.addf %119, %118 : vector<8x512xf32>
    %121 = arith.divf %119, %120 : vector<8x512xf32>
    %122 = vector.extract_strided_slice %121 {offsets = [0, 0], sizes = [8, 128], strides = [1, 1]} : vector<8x512xf32> to vector<8x128xf32>
    %123 = vector.extract_strided_slice %121 {offsets = [0, 128], sizes = [8, 128], strides = [1, 1]} : vector<8x512xf32> to vector<8x128xf32>
    %124 = vector.extract_strided_slice %121 {offsets = [0, 256], sizes = [8, 128], strides = [1, 1]} : vector<8x512xf32> to vector<8x128xf32>
    %125 = vector.extract_strided_slice %121 {offsets = [0, 384], sizes = [8, 128], strides = [1, 1]} : vector<8x512xf32> to vector<8x128xf32>
    %126 = arith.mulf %122, %110 : vector<8x128xf32>
    %127 = arith.mulf %123, %125 : vector<8x128xf32>
    %128 = arith.addf %126, %127 : vector<8x128xf32>
    %129 = math.tanh %128 : vector<8x128xf32>
    %130 = arith.mulf %124, %129 : vector<8x128xf32>
    %c0_35 = arith.constant 0 : index
    %c768 = arith.constant 768 : index
    %131 = vector.load %arg4[%c0_35, %c768] : memref<8x1024xf32, #tpu.memory_space<vmem>>, vector<8x128xf32>
    tpu.vector_store %arg4[%c0_35, %c768], %130 {strides = array<i32>} : memref<8x1024xf32, #tpu.memory_space<vmem>>, vector<8x128xf32>,
    %c0_36 = arith.constant 0 : index
    %c3584 = arith.constant 3584 : index
    %132 = vector.load %arg2[%c0_36, %c3584] : memref<8x4096xf32, #tpu.memory_space<vmem>>, vector<8x512xf32>
    %cst_37 = arith.constant dense<0.000000e+00> : vector<8x512xf32>
    %133 = tpu.matmul %130, %5, %cst_37 {dimension_numbers = #tpu.dot_dimension_numbers<[1], [0], [0], [1], [0, 0, 1, 1], [], []>} : vector<8x128xf32>, vector<128x512xf32>, vector<8x512xf32> -> vector<8x512xf32>
    %134 = arith.addf %132, %133 : vector<8x512xf32>
    %135 = arith.negf %134 : vector<8x512xf32>
    %136 = math.exp %135 : vector<8x512xf32>
    %cst_38 = arith.constant 1.000000e+00 : f32
    %137 = vector.broadcast %cst_38 : f32 to vector<8x512xf32>
    %138 = arith.addf %137, %136 : vector<8x512xf32>
    %139 = arith.divf %137, %138 : vector<8x512xf32>
    %140 = vector.extract_strided_slice %139 {offsets = [0, 0], sizes = [8, 128], strides = [1, 1]} : vector<8x512xf32> to vector<8x128xf32>
    %141 = vector.extract_strided_slice %139 {offsets = [0, 128], sizes = [8, 128], strides = [1, 1]} : vector<8x512xf32> to vector<8x128xf32>
    %142 = vector.extract_strided_slice %139 {offsets = [0, 256], sizes = [8, 128], strides = [1, 1]} : vector<8x512xf32> to vector<8x128xf32>
    %143 = vector.extract_strided_slice %139 {offsets = [0, 384], sizes = [8, 128], strides = [1, 1]} : vector<8x512xf32> to vector<8x128xf32>
    %144 = arith.mulf %140, %128 : vector<8x128xf32>
    %145 = arith.mulf %141, %143 : vector<8x128xf32>
    %146 = arith.addf %144, %145 : vector<8x128xf32>
    %147 = math.tanh %146 : vector<8x128xf32>
    %148 = arith.mulf %142, %147 : vector<8x128xf32>
    %c0_39 = arith.constant 0 : index
    %c896 = arith.constant 896 : index
    %149 = vector.load %arg4[%c0_39, %c896] : memref<8x1024xf32, #tpu.memory_space<vmem>>, vector<8x128xf32>
    tpu.vector_store %arg4[%c0_39, %c896], %148 {strides = array<i32>} : memref<8x1024xf32, #tpu.memory_space<vmem>>, vector<8x128xf32>,
    %c0_40 = arith.constant 0 : index
    %c0_41 = arith.constant 0 : index
    %150 = vector.load %arg5[%c0_40, %c0_41] : memref<8x128xf32, #tpu.memory_space<vmem>>, vector<8x128xf32>
    tpu.vector_store %arg5[%c0_40, %c0_41], %148 {strides = array<i32>} : memref<8x128xf32, #tpu.memory_space<vmem>>, vector<8x128xf32>,
    %c0_42 = arith.constant 0 : index
    %c0_43 = arith.constant 0 : index
    %151 = vector.load %arg6[%c0_42, %c0_43] : memref<8x128xf32, #tpu.memory_space<vmem>>, vector<8x128xf32>
    tpu.vector_store %arg6[%c0_42, %c0_43], %146 {strides = array<i32>} : memref<8x128xf32, #tpu.memory_space<vmem>>, vector<8x128xf32>,
    return
  }
  func.func @transform_0(%arg0: i32, %arg1: i32) -> (i32, i32) {
    %c0_i32 = arith.constant 0 : i32
    return %arg0, %arg1 : i32, i32
  }
  func.func @transform_1(%arg0: i32, %arg1: i32) -> (i32, i32) {
    %c0_i32 = arith.constant 0 : i32
    %c0_i32_0 = arith.constant 0 : i32
    %c0_i32_1 = arith.constant 0 : i32
    return %c0_i32, %c0_i32_0 : i32, i32
  }
  func.func @transform_2(%arg0: i32, %arg1: i32) -> (i32, i32) {
    %c0_i32 = arith.constant 0 : i32
    return %arg0, %arg1 : i32, i32
  }
}

module attributes {stable_mosaic.version = 11 : i64} {
  func.func @_matmul_bias_kernel(%arg0: i32, %arg1: i32, %arg2: memref<64x32xf32, #tpu.memory_space<vmem>>, %arg3: memref<32x512xf32, #tpu.memory_space<vmem>>, %arg4: memref<1x512xf32, #tpu.memory_space<vmem>>, %arg5: memref<64x512xf32, #tpu.memory_space<vmem>>) attributes {dimension_semantics = [#tpu.dimension_semantics<parallel>, #tpu.dimension_semantics<parallel>], iteration_bounds = array<i64: 1, 1>, scalar_prefetch = 0 : i64, scratch_operands = 0 : i64, tpu.core_type = #tpu.core_type<tc>, window_params = [{transform_indices = @transform_0, window_bounds = array<i64: 64, 32>}, {transform_indices = @transform_1, window_bounds = array<i64: 32, 512>}, {transform_indices = @transform_2, window_bounds = array<i64: 1, 512>}, {transform_indices = @transform_3, window_bounds = array<i64: 64, 512>}]} {
    %c0 = arith.constant 0 : index
    %c0_0 = arith.constant 0 : index
    %0 = vector.load %arg2[%c0, %c0_0] : memref<64x32xf32, #tpu.memory_space<vmem>>, vector<64x32xf32>
    %c0_1 = arith.constant 0 : index
    %c0_2 = arith.constant 0 : index
    %1 = vector.load %arg3[%c0_1, %c0_2] : memref<32x512xf32, #tpu.memory_space<vmem>>, vector<32x512xf32>
    %cst = arith.constant dense<0.000000e+00> : vector<64x512xf32>
    %2 = tpu.matmul %0, %1, %cst {dimension_numbers = #tpu.dot_dimension_numbers<[1], [0], [0], [1], [0, 0, 1, 1], [], []>} : vector<64x32xf32>, vector<32x512xf32>, vector<64x512xf32> -> vector<64x512xf32>
    %c0_3 = arith.constant 0 : index
    %c0_4 = arith.constant 0 : index
    %3 = vector.load %arg4[%c0_3, %c0_4] : memref<1x512xf32, #tpu.memory_space<vmem>>, vector<1x512xf32>
    %4 = vector.broadcast %3 : vector<1x512xf32> to vector<64x512xf32>
    %5 = arith.addf %2, %4 : vector<64x512xf32>
    %c0_5 = arith.constant 0 : index
    %c0_6 = arith.constant 0 : index
    %6 = vector.load %arg5[%c0_5, %c0_6] : memref<64x512xf32, #tpu.memory_space<vmem>>, vector<64x512xf32>
    tpu.vector_store %arg5[%c0_5, %c0_6], %5 {strides = array<i32>} : memref<64x512xf32, #tpu.memory_space<vmem>>, vector<64x512xf32>,
    return
  }
  func.func @transform_0(%arg0: i32, %arg1: i32) -> (i32, i32) {
    %c0_i32 = arith.constant 0 : i32
    %c0_i32_0 = arith.constant 0 : i32
    return %arg0, %c0_i32 : i32, i32
  }
  func.func @transform_1(%arg0: i32, %arg1: i32) -> (i32, i32) {
    %c0_i32 = arith.constant 0 : i32
    %c0_i32_0 = arith.constant 0 : i32
    return %c0_i32, %arg1 : i32, i32
  }
  func.func @transform_2(%arg0: i32, %arg1: i32) -> (i32, i32) {
    %c0_i32 = arith.constant 0 : i32
    %c0_i32_0 = arith.constant 0 : i32
    return %c0_i32, %arg1 : i32, i32
  }
  func.func @transform_3(%arg0: i32, %arg1: i32) -> (i32, i32) {
    %c0_i32 = arith.constant 0 : i32
    return %arg0, %arg1 : i32, i32
  }
}

module attributes {stable_mosaic.version = 11 : i64} {
  func.func @_matmul_kernel(%arg0: i32, %arg1: i32, %arg2: memref<64x128xf32, #tpu.memory_space<vmem>>, %arg3: memref<128x128xf32, #tpu.memory_space<vmem>>, %arg4: memref<64x128xf32, #tpu.memory_space<vmem>>) attributes {dimension_semantics = [#tpu.dimension_semantics<parallel>, #tpu.dimension_semantics<parallel>], iteration_bounds = array<i64: 1, 1>, scalar_prefetch = 0 : i64, scratch_operands = 0 : i64, tpu.core_type = #tpu.core_type<tc>, window_params = [{transform_indices = @transform_0, window_bounds = array<i64: 64, 128>}, {transform_indices = @transform_1, window_bounds = array<i64: 128, 128>}, {transform_indices = @transform_2, window_bounds = array<i64: 64, 128>}]} {
    %c0 = arith.constant 0 : index
    %c0_0 = arith.constant 0 : index
    %0 = vector.load %arg2[%c0, %c0_0] : memref<64x128xf32, #tpu.memory_space<vmem>>, vector<64x128xf32>
    %c0_1 = arith.constant 0 : index
    %c0_2 = arith.constant 0 : index
    %1 = vector.load %arg3[%c0_1, %c0_2] : memref<128x128xf32, #tpu.memory_space<vmem>>, vector<128x128xf32>
    %cst = arith.constant dense<0.000000e+00> : vector<64x128xf32>
    %2 = tpu.matmul %0, %1, %cst {dimension_numbers = #tpu.dot_dimension_numbers<[1], [0], [0], [1], [0, 0, 1, 1], [], []>} : vector<64x128xf32>, vector<128x128xf32>, vector<64x128xf32> -> vector<64x128xf32>
    %c0_3 = arith.constant 0 : index
    %c0_4 = arith.constant 0 : index
    %3 = vector.load %arg4[%c0_3, %c0_4] : memref<64x128xf32, #tpu.memory_space<vmem>>, vector<64x128xf32>
    tpu.vector_store %arg4[%c0_3, %c0_4], %2 {strides = array<i32>} : memref<64x128xf32, #tpu.memory_space<vmem>>, vector<64x128xf32>,
    return
  }
  func.func @transform_0(%arg0: i32, %arg1: i32) -> (i32, i32) {
    %c0_i32 = arith.constant 0 : i32
    %c0_i32_0 = arith.constant 0 : i32
    return %arg0, %c0_i32 : i32, i32
  }
  func.func @transform_1(%arg0: i32, %arg1: i32) -> (i32, i32) {
    %c0_i32 = arith.constant 0 : i32
    %c0_i32_0 = arith.constant 0 : i32
    return %c0_i32, %arg1 : i32, i32
  }
  func.func @transform_2(%arg0: i32, %arg1: i32) -> (i32, i32) {
    %c0_i32 = arith.constant 0 : i32
    return %arg0, %arg1 : i32, i32
  }
}

</mosaic_0001>

<bundles_post_ra>
// kernel: model_forward.5
= control target key start
LH: loop header
LB: loop body
LE: loop exit
PB: predicated region body
PF: predicated region fallthrough
CT: control target
= control target key end

     0   :  { %s379_s1 = inlined_call_operand.vmem [shape: f32[128,128], index: 1, kind: input, shape index: {}]   ;;  %s380_s0 = inlined_call_operand.vmem [shape: f32[64,128], index: 0, kind: input, shape index: {}]   ;;  %s381_s2 = inlined_call_operand.vmem [shape: f32[64,128], index: 2, kind: output, shape index: {}]  }
   0x1   :  { %v19_v0 = vld [vmem:[%s379_s1] sm:$0xff]  ;;  %v20_v1 = vld [vmem:[%s379_s1 + $0x8] sm:$0xff]  ;;  %v21_v2 = vld [vmem:[%s379_s1 + $0x10] sm:$0xff] }
   0x2   :  { %v220_v3 = vpack.c.bf16 %v20_v1, %v19_v0  ;;  %v22_v4 = vld [vmem:[%s379_s1 + $0x18] sm:$0xff]  ;;  %v23_v6 = vld [vmem:[%s379_s1 + $0x20] sm:$0xff]  ;;  %v24_v7 = vld [vmem:[%s379_s1 + $0x28] sm:$0xff] }
   0x3   :  { %v224_v5 = vpack.c.bf16 %v22_v4, %v21_v2  ;;  %v228_v8 = vpack.c.bf16 %v24_v7, %v23_v6  ;;  %v11_v9 = vld [vmem:[%s380_s0] sm:$0xff]  ;;  %v25_v11 = vld [vmem:[%s379_s1 + $0x30] sm:$0xff]  ;;  %v26_v12 = vld [vmem:[%s379_s1 + $0x38] sm:$0xff] }
   0x4   :  { %221 = vmatprep.subr.bf16.mxu0 %v220_v3  ;;  %252 = vmatprep.subr.bf16.mxu1 %v220_v3  ;;  %v15_v10 = vld [vmem:[%s380_s0 + $0x20] sm:$0xff]  ;;  %v232_v13 = vpack.c.bf16 %v26_v12, %v25_v11  ;;  %v28_v15 = vld [vmem:[%s379_s1 + $0x48] sm:$0xff]  ;;  %v29_v17 = vld [vmem:[%s379_s1 + $0x50] sm:$0xff] }
   0x5   :  { %223 = vmatpush3.bf16.msra.mxu0 %v220_v3  ;;  %260 = vmatpush3.bf16.msra.mxu1 %v220_v3  ;;  %v27_v14 = vld [vmem:[%s379_s1 + $0x40] sm:$0xff]  ;;  %v30_v18 = vld [vmem:[%s379_s1 + $0x58] sm:$0xff]  ;;  %v32_v21 = vld [vmem:[%s379_s1 + $0x68] sm:$0xff] }
   0x6   :  { %225 = vmatprep.subr.bf16.mxu0 %v224_v5  ;;  %253 = vmatprep.subr.bf16.mxu1 %v224_v5  ;;  %v236_v16 = vpack.c.bf16 %v28_v15, %v27_v14  ;;  %v240_v19 = vpack.c.bf16 %v30_v18, %v29_v17  ;;  %v31_v20 = vld [vmem:[%s379_s1 + $0x60] sm:$0xff]  ;;  %v33_v23 = vld [vmem:[%s379_s1 + $0x70] sm:$0xff]  ;;  %v34_v24 = vld [vmem:[%s379_s1 + $0x78] sm:$0xff] }
   0x7   :  { %208 = vmatprep.mubr.f32.mxu0 %v11_v9  ;;  %214 = vmatprep.mubr.f32.mxu1 %v15_v10  ;;  %v244_v22 = vpack.c.bf16 %v32_v21, %v31_v20  ;;  %v248_v25 = vpack.c.bf16 %v34_v24, %v33_v23  ;;  %v12_v26 = vld [vmem:[%s380_s0 + $0x8] sm:$0xff]  ;;  %v13_v28 = vld [vmem:[%s380_s0 + $0x10] sm:$0xff]  ;;  %v14_v30 = vld [vmem:[%s380_s0 + $0x18] sm:$0xff] }
   0x8   :  { %v16_v27 = vld [vmem:[%s380_s0 + $0x28] sm:$0xff]  ;;  %v17_v29 = vld [vmem:[%s380_s0 + $0x30] sm:$0xff]  ;;  %v18_v31 = vld [vmem:[%s380_s0 + $0x38] sm:$0xff] }
   0x9   :  { %227 = vmatpush3.bf16.msra.mxu0 %v224_v5  ;;  %261 = vmatpush3.bf16.msra.mxu1 %v224_v5 }
   0xa   :  { %229 = vmatprep.subr.bf16.mxu0 %v228_v8  ;;  %254 = vmatprep.subr.bf16.mxu1 %v228_v8 }
   0xd   :  { %231 = vmatpush3.bf16.msra.mxu0 %v228_v8  ;;  %262 = vmatpush3.bf16.msra.mxu1 %v228_v8 }
   0xe   :  { %233 = vmatprep.subr.bf16.mxu0 %v232_v13  ;;  %255 = vmatprep.subr.bf16.mxu1 %v232_v13 }
  0x11   :  { %235 = vmatpush3.bf16.msra.mxu0 %v232_v13  ;;  %263 = vmatpush3.bf16.msra.mxu1 %v232_v13 }
  0x12   :  { %237 = vmatprep.subr.bf16.mxu0 %v236_v16  ;;  %256 = vmatprep.subr.bf16.mxu1 %v236_v16 }
  0x15   :  { %239 = vmatpush3.bf16.msra.mxu0 %v236_v16  ;;  %264 = vmatpush3.bf16.msra.mxu1 %v236_v16 }
  0x16   :  { %241 = vmatprep.subr.bf16.mxu0 %v240_v19  ;;  %257 = vmatprep.subr.bf16.mxu1 %v240_v19 }
  0x19   :  { %243 = vmatpush3.bf16.msra.mxu0 %v240_v19  ;;  %265 = vmatpush3.bf16.msra.mxu1 %v240_v19 }
  0x1a   :  { %245 = vmatprep.subr.bf16.mxu0 %v244_v22  ;;  %258 = vmatprep.subr.bf16.mxu1 %v244_v22 }
  0x1d   :  { %247 = vmatpush3.bf16.msra.mxu0 %v244_v22  ;;  %266 = vmatpush3.bf16.msra.mxu1 %v244_v22 }
  0x1e   :  { %249 = vmatprep.subr.bf16.mxu0 %v248_v25  ;;  %259 = vmatprep.subr.bf16.mxu1 %v248_v25 }
  0x21   :  { %251 = vmatpush3.bf16.msra.mxu0 %v248_v25  ;;  %267 = vmatpush3.bf16.msra.mxu1 %v248_v25 }
  0x24   :  { %209 = vmatmul.mubr.f32.vlgmr.msra.gmra.mrb[0].mxu0 %v12_v26  ;;  %215 = vmatmul.mubr.f32.vlgmr.msra.gmra.mrb[0].mxu1 %v16_v27 }
  0x25   :  { %211 = vmatprep.mubr.f32.mxu0 %v13_v28  ;;  %217 = vmatprep.mubr.f32.mxu1 %v17_v29 }
  0x28   :  { %212 = vmatmul.mubr.f32.gmra.mrb[2].mxu0 %v14_v30  ;;  %218 = vmatmul.mubr.f32.gmra.mrb[2].mxu1 %v18_v31 }
  0xf7   :  { %v210_v32 = vpop.f32.mrb[0].mxu0  ;;  %v216_v33 = vpop.f32.mrb[0].mxu1 }
  0xf8   :  { %141 = vst [vmem:[%s381_s2 + $0x8] sm:$0xff] %v210_v32  ;;  %145 = vst [vmem:[%s381_s2 + $0x28] sm:$0xff] %v216_v33  ;;  %v101_v34 = vpop.f32.mrb[1].mxu0  ;;  %v121_v35 = vpop.f32.mrb[1].mxu1 }
  0xf9   :  { %140 = vst [vmem:[%s381_s2] sm:$0xff] %v101_v34  ;;  %144 = vst [vmem:[%s381_s2 + $0x20] sm:$0xff] %v121_v35 }
  0xfb   :  { %v213_v36 = vpop.f32.mrb[2].mxu0  ;;  %v219_v37 = vpop.f32.mrb[2].mxu1 }
  0xfc   :  { %143 = vst [vmem:[%s381_s2 + $0x18] sm:$0xff] %v213_v36  ;;  %147 = vst [vmem:[%s381_s2 + $0x38] sm:$0xff] %v219_v37  ;;  %v111_v38 = vpop.f32.mrb[3].mxu0  ;;  %v131_v39 = vpop.f32.mrb[3].mxu1 }
  0xfd   :  { %142 = vst [vmem:[%s381_s2 + $0x10] sm:$0xff] %v111_v38  ;;  %146 = vst [vmem:[%s381_s2 + $0x30] sm:$0xff] %v131_v39 }

// kernel: model_forward.3
= control target key start
LH: loop header
LB: loop body
LE: loop exit
PB: predicated region body
PF: predicated region fallthrough
CT: control target
= control target key end

     0   :  { %v380_v3 = vmov 0.0   ;;  %vm60_vm0 = vcmask 261120   ;;  %v40_v33 = vlaneseq  ;;  %s644_s1 = inlined_call_operand.vmem [shape: f32[32,512], index: 1, kind: input, shape index: {}]   ;;  %s645_s0 = inlined_call_operand.vmem [shape: f32[64,32], index: 0, kind: input, shape index: {}]   ;;  %s646_s2 = inlined_call_operand.vmem [shape: f32[1,512], index: 2, kind: input, shape index: {}]   ;;  %s647_s3 = inlined_call_operand.vmem [shape: f32[64,512], index: 3, kind: output, shape index: {}]  }
   0x1   :  { %v23_v0 = vld [vmem:[%s644_s1 + $0x8] sm:$0xff]  ;;  %v25_v2 = vld [vmem:[%s644_s1 + $0x18] sm:$0xff]  ;;  %149 = vmatprep.mubr.f32.mxu0 %v380_v3  ;;  %262 = vmatprep.mubr.f32.mxu1 %v380_v3  ;;  %v22_v6 = vld [vmem:[%s644_s1] sm:$0xff] }
   0x2   :  { %v27_v1 = vld [vmem:[%s644_s1 + $0x28] sm:$0xff]  ;;  %v29_v5 = vld [vmem:[%s644_s1 + $0x38] sm:$0xff]  ;;  %v26_v7 = vld [vmem:[%s644_s1 + $0x20] sm:$0xff]  ;;  %v41_v34 = vshrl.u32 %v40_v33, 7 }
   0x3   :  { %v363_v4 = vpack.c.bf16 %v27_v1, %v23_v0  ;;  %v371_v8 = vpack.c.bf16 %v29_v5, %v25_v2  ;;  %v365_v9 = vpack.c.bf16 %v26_v7, %v22_v6  ;;  %v24_v10 = vld [vmem:[%s644_s1 + $0x10] sm:$0xff]  ;;  %v31_v12 = vld [vmem:[%s644_s1 + $0x48] sm:$0xff]  ;;  %v33_v15 = vld [vmem:[%s644_s1 + $0x58] sm:$0xff] }
   0x4   :  { %v28_v11 = vld [vmem:[%s644_s1 + $0x30] sm:$0xff]  ;;  %v35_v14 = vld [vmem:[%s644_s1 + $0x68] sm:$0xff]  ;;  %v37_v16 = vld [vmem:[%s644_s1 + $0x78] sm:$0xff]  ;;  %v42_v35 = vsub.s32 0, %v41_v34  ;;  %v50_v37 = vsub.s32 2, %v41_v34  ;;  %v46_v38 = vsub.s32 1, %v41_v34 }
   0x5   :  { %364 = vmatprep.subr.bf16.mxu0 %v363_v4  ;;  %v373_v13 = vpack.c.bf16 %v28_v11, %v24_v10  ;;  %372 = vmatprep.subr.bf16.mxu1 %v371_v8  ;;  %v367_v17 = vpack.c.bf16 %v35_v14, %v31_v12  ;;  %v375_v18 = vpack.c.bf16 %v37_v16, %v33_v15  ;;  %v30_v19 = vld [vmem:[%s644_s1 + $0x40] sm:$0xff]  ;;  %v32_v21 = vld [vmem:[%s644_s1 + $0x50] sm:$0xff]  ;;  %v15_v26 = vld [vmem:[%s645_s0 + $0x8] sm:$0xff]  ;;  %v54_v39 = vsub.s32 3, %v41_v34 }
   0x6   :  { %366 = vmatpush1.bf16.msra.mxu0 %v365_v9  ;;  %v34_v20 = vld [vmem:[%s644_s1 + $0x60] sm:$0xff]  ;;  %v36_v23 = vld [vmem:[%s644_s1 + $0x70] sm:$0xff]  ;;  %v17_v28 = vld [vmem:[%s645_s0 + $0x18] sm:$0xff] }
   0x7   :  { %374 = vmatpush1.bf16.msra.mxu1 %v373_v13  ;;  %v369_v22 = vpack.c.bf16 %v34_v20, %v30_v19  ;;  %368 = vmatprep.subr.bf16.mxu0 %v367_v17  ;;  %v377_v24 = vpack.c.bf16 %v36_v23, %v32_v21  ;;  %v14_v25 = vld [vmem:[%s645_s0] sm:$0xff]  ;;  %v16_v27 = vld [vmem:[%s645_s0 + $0x10] sm:$0xff]  ;;  %v19_v30 = vld [vmem:[%s645_s0 + $0x28] sm:$0xff] }
   0x8   :  { %376 = vmatprep.subr.bf16.mxu1 %v375_v18  ;;  %v18_v29 = vld [vmem:[%s645_s0 + $0x20] sm:$0xff]  ;;  %v20_v31 = vld [vmem:[%s645_s0 + $0x30] sm:$0xff]  ;;  %v21_v32 = vld [vmem:[%s645_s0 + $0x38] sm:$0xff] }
   0x9   :  { %v38_v36 = vld [vmem:[%s646_s2] sm:$0xf] }
   0xa   :  { %370 = vmatpush1.bf16.msra.mxu0 %v369_v22  ;;  %v508_v40 = vrot.slane %v38_v36, %v42_v35  ;;  %v510_v41 = vrot.slane %v38_v36, %v50_v37  ;;  %v512_v42 = vrot.slane %v38_v36, %v46_v38  ;;  %v514_v43 = vrot.slane %v38_v36, %v54_v39 }
   0xb   :  { %378 = vmatpush1.bf16.msra.mxu1 %v377_v24 }
   0xd   :  { %347 = vmatmul.mubr.msk.f32.vlgmr.msra.gmra.mrb[0].mxu0 %vm60_vm0, %v14_v25 }
   0xe   :  { %355 = vmatmul.mubr.msk.f32.vlgmr.msra.gmra.mrb[0].mxu1 %vm60_vm0, %v14_v25  ;;  %155 = vmatprep.mubr.f32.mxu0 %v380_v3 }
   0xf   :  { %268 = vmatprep.mubr.f32.mxu1 %v380_v3 }
  0x11   :  { %348 = vmatmul.mubr.msk.f32.gmra.mrb[2].mxu0 %vm60_vm0, %v15_v26 }
  0x12   :  { %356 = vmatmul.mubr.msk.f32.gmra.mrb[2].mxu1 %vm60_vm0, %v15_v26  ;;  %161 = vmatprep.mubr.f32.mxu0 %v380_v3 }
  0x13   :  { %274 = vmatprep.mubr.f32.mxu1 %v380_v3 }
  0x15   :  { %349 = vmatmul.mubr.msk.f32.gmra.mrb[4].mxu0 %vm60_vm0, %v16_v27 }
  0x16   :  { %357 = vmatmul.mubr.msk.f32.gmra.mrb[4].mxu1 %vm60_vm0, %v16_v27  ;;  %167 = vmatprep.mubr.f32.mxu0 %v380_v3 }
  0x17   :  { %280 = vmatprep.mubr.f32.mxu1 %v380_v3 }
  0x19   :  { %350 = vmatmul.mubr.msk.f32.gmra.mrb[6].mxu0 %vm60_vm0, %v17_v28 }
  0x1a   :  { %358 = vmatmul.mubr.msk.f32.gmra.mrb[6].mxu1 %vm60_vm0, %v17_v28  ;;  %173 = vmatprep.mubr.f32.mxu0 %v380_v3 }
  0x1b   :  { %286 = vmatprep.mubr.f32.mxu1 %v380_v3 }
  0x1d   :  { %351 = vmatmul.mubr.msk.f32.gmra.mrb[8].mxu0 %vm60_vm0, %v18_v29 }
  0x1e   :  { %359 = vmatmul.mubr.msk.f32.gmra.mrb[8].mxu1 %vm60_vm0, %v18_v29  ;;  %179 = vmatprep.mubr.f32.mxu0 %v380_v3 }
  0x1f   :  { %292 = vmatprep.mubr.f32.mxu1 %v380_v3 }
  0x21   :  { %352 = vmatmul.mubr.msk.f32.gmra.mrb[10].mxu0 %vm60_vm0, %v19_v30 }
  0x22   :  { %360 = vmatmul.mubr.msk.f32.gmra.mrb[10].mxu1 %vm60_vm0, %v19_v30  ;;  %185 = vmatprep.mubr.f32.mxu0 %v380_v3 }
  0x23   :  { %298 = vmatprep.mubr.f32.mxu1 %v380_v3 }
  0x25   :  { %353 = vmatmul.mubr.msk.f32.gmra.mrb[12].mxu0 %vm60_vm0, %v20_v31 }
  0x26   :  { %361 = vmatmul.mubr.msk.f32.gmra.mrb[12].mxu1 %vm60_vm0, %v20_v31  ;;  %191 = vmatprep.mubr.f32.mxu0 %v380_v3 }
  0x27   :  { %304 = vmatprep.mubr.f32.mxu1 %v380_v3 }
  0x29   :  { %354 = vmatmul.mubr.msk.f32.gmra.mrb[14].mxu0 %vm60_vm0, %v21_v32 }
  0x2a   :  { %362 = vmatmul.mubr.msk.f32.gmra.mrb[14].mxu1 %vm60_vm0, %v21_v32 }
  0xe0   :  { %v151_v44 = vpop.f32.mrb[0].mxu0 }
  0xe1   :  { %v152_v45 = vadd.f32 %v151_v44, %v508_v40  ;;  %v264_v46 = vpop.f32.mrb[0].mxu1  ;;  %v153_v47 = vpop.f32.mrb[1].mxu0 }
  0xe2   :  { %v265_v48 = vadd.f32 %v264_v46, %v510_v41  ;;  %v154_v49 = vadd.f32 %v153_v47, %v512_v42  ;;  %v266_v50 = vpop.f32.mrb[1].mxu1 }
  0xe3   :  { %311 = vst [vmem:[%s647_s3] sm:$0xff] %v152_v45  ;;  %v267_v51 = vadd.f32 %v266_v50, %v514_v43 }
  0xe4   :  { %313 = vst [vmem:[%s647_s3 + $0x10] sm:$0xff] %v265_v48  ;;  %312 = vst [vmem:[%s647_s3 + $0x8] sm:$0xff] %v154_v49  ;;  %v157_v52 = vpop.f32.mrb[2].mxu0 }
  0xe5   :  { %314 = vst [vmem:[%s647_s3 + $0x18] sm:$0xff] %v267_v51  ;;  %v158_v53 = vadd.f32 %v157_v52, %v508_v40  ;;  %v270_v54 = vpop.f32.mrb[2].mxu1  ;;  %v159_v55 = vpop.f32.mrb[3].mxu0 }
  0xe6   :  { %v271_v56 = vadd.f32 %v270_v54, %v510_v41  ;;  %v160_v57 = vadd.f32 %v159_v55, %v512_v42  ;;  %v272_v58 = vpop.f32.mrb[3].mxu1 }
  0xe7   :  { %315 = vst [vmem:[%s647_s3 + $0x20] sm:$0xff] %v158_v53  ;;  %v273_v59 = vadd.f32 %v272_v58, %v514_v43 }
  0xe8   :  { %317 = vst [vmem:[%s647_s3 + $0x30] sm:$0xff] %v271_v56  ;;  %316 = vst [vmem:[%s647_s3 + $0x28] sm:$0xff] %v160_v57  ;;  %v163_v60 = vpop.f32.mrb[4].mxu0 }
  0xe9   :  { %318 = vst [vmem:[%s647_s3 + $0x38] sm:$0xff] %v273_v59  ;;  %v164_v61 = vadd.f32 %v163_v60, %v508_v40  ;;  %v276_v62 = vpop.f32.mrb[4].mxu1  ;;  %v165_v63 = vpop.f32.mrb[5].mxu0 }
  0xea   :  { %v277_v0 = vadd.f32 %v276_v62, %v510_v41  ;;  %v166_v1 = vadd.f32 %v165_v63, %v512_v42  ;;  %v278_v2 = vpop.f32.mrb[5].mxu1 }
  0xeb   :  { %319 = vst [vmem:[%s647_s3 + $0x40] sm:$0xff] %v164_v61  ;;  %v279_v3 = vadd.f32 %v278_v2, %v514_v43 }
  0xec   :  { %321 = vst [vmem:[%s647_s3 + $0x50] sm:$0xff] %v277_v0  ;;  %320 = vst [vmem:[%s647_s3 + $0x48] sm:$0xff] %v166_v1  ;;  %v169_v4 = vpop.f32.mrb[6].mxu0 }
  0xed   :  { %322 = vst [vmem:[%s647_s3 + $0x58] sm:$0xff] %v279_v3  ;;  %v170_v5 = vadd.f32 %v169_v4, %v508_v40  ;;  %v282_v6 = vpop.f32.mrb[6].mxu1  ;;  %v171_v7 = vpop.f32.mrb[7].mxu0 }
  0xee   :  { %v283_v8 = vadd.f32 %v282_v6, %v510_v41  ;;  %v172_v9 = vadd.f32 %v171_v7, %v512_v42  ;;  %v284_v10 = vpop.f32.mrb[7].mxu1 }
  0xef   :  { %323 = vst [vmem:[%s647_s3 + $0x60] sm:$0xff] %v170_v5  ;;  %v285_v11 = vadd.f32 %v284_v10, %v514_v43 }
  0xf0   :  { %325 = vst [vmem:[%s647_s3 + $0x70] sm:$0xff] %v283_v8  ;;  %324 = vst [vmem:[%s647_s3 + $0x68] sm:$0xff] %v172_v9  ;;  %v175_v12 = vpop.f32.mrb[8].mxu0 }
  0xf1   :  { %326 = vst [vmem:[%s647_s3 + $0x78] sm:$0xff] %v285_v11  ;;  %v176_v13 = vadd.f32 %v175_v12, %v508_v40  ;;  %v288_v14 = vpop.f32.mrb[8].mxu1  ;;  %v177_v15 = vpop.f32.mrb[9].mxu0 }
  0xf2   :  { %v289_v16 = vadd.f32 %v288_v14, %v510_v41  ;;  %v178_v17 = vadd.f32 %v177_v15, %v512_v42  ;;  %v290_v18 = vpop.f32.mrb[9].mxu1 }
  0xf3   :  { %327 = vst [vmem:[%s647_s3 + $0x80] sm:$0xff] %v176_v13  ;;  %v291_v19 = vadd.f32 %v290_v18, %v514_v43 }
  0xf4   :  { %329 = vst [vmem:[%s647_s3 + $0x90] sm:$0xff] %v289_v16  ;;  %328 = vst [vmem:[%s647_s3 + $0x88] sm:$0xff] %v178_v17  ;;  %v181_v20 = vpop.f32.mrb[10].mxu0 }
  0xf5   :  { %330 = vst [vmem:[%s647_s3 + $0x98] sm:$0xff] %v291_v19  ;;  %v182_v21 = vadd.f32 %v181_v20, %v508_v40  ;;  %v294_v22 = vpop.f32.mrb[10].mxu1  ;;  %v183_v23 = vpop.f32.mrb[11].mxu0 }
  0xf6   :  { %v295_v24 = vadd.f32 %v294_v22, %v510_v41  ;;  %v184_v25 = vadd.f32 %v183_v23, %v512_v42  ;;  %v296_v26 = vpop.f32.mrb[11].mxu1 }
  0xf7   :  { %331 = vst [vmem:[%s647_s3 + $0xa0] sm:$0xff] %v182_v21  ;;  %v297_v27 = vadd.f32 %v296_v26, %v514_v43 }
  0xf8   :  { %333 = vst [vmem:[%s647_s3 + $0xb0] sm:$0xff] %v295_v24  ;;  %332 = vst [vmem:[%s647_s3 + $0xa8] sm:$0xff] %v184_v25  ;;  %v187_v28 = vpop.f32.mrb[12].mxu0 }
  0xf9   :  { %334 = vst [vmem:[%s647_s3 + $0xb8] sm:$0xff] %v297_v27  ;;  %v188_v29 = vadd.f32 %v187_v28, %v508_v40  ;;  %v300_v30 = vpop.f32.mrb[12].mxu1  ;;  %v189_v31 = vpop.f32.mrb[13].mxu0 }
  0xfa   :  { %v301_v32 = vadd.f32 %v300_v30, %v510_v41  ;;  %v190_v33 = vadd.f32 %v189_v31, %v512_v42  ;;  %v302_v34 = vpop.f32.mrb[13].mxu1 }
  0xfb   :  { %335 = vst [vmem:[%s647_s3 + $0xc0] sm:$0xff] %v188_v29  ;;  %v303_v35 = vadd.f32 %v302_v34, %v514_v43 }
  0xfc   :  { %337 = vst [vmem:[%s647_s3 + $0xd0] sm:$0xff] %v301_v32  ;;  %336 = vst [vmem:[%s647_s3 + $0xc8] sm:$0xff] %v190_v33  ;;  %v193_v36 = vpop.f32.mrb[14].mxu0 }
  0xfd   :  { %338 = vst [vmem:[%s647_s3 + $0xd8] sm:$0xff] %v303_v35  ;;  %v194_v37 = vadd.f32 %v193_v36, %v508_v40  ;;  %v306_v38 = vpop.f32.mrb[14].mxu1  ;;  %v195_v39 = vpop.f32.mrb[15].mxu0 }
  0xfe   :  { %v307_v44 = vadd.f32 %v306_v38, %v510_v41  ;;  %v196_v45 = vadd.f32 %v195_v39, %v512_v42  ;;  %v308_v46 = vpop.f32.mrb[15].mxu1 }
  0xff   :  { %339 = vst [vmem:[%s647_s3 + $0xe0] sm:$0xff] %v194_v37  ;;  %v309_v47 = vadd.f32 %v308_v46, %v514_v43 }
 0x100   :  { %341 = vst [vmem:[%s647_s3 + $0xf0] sm:$0xff] %v307_v44  ;;  %340 = vst [vmem:[%s647_s3 + $0xe8] sm:$0xff] %v196_v45 }
 0x101   :  { %342 = vst [vmem:[%s647_s3 + $0xf8] sm:$0xff] %v309_v47 }

// kernel: model_forward.4
= control target key start
LH: loop header
LB: loop body
LE: loop exit
PB: predicated region body
PF: predicated region fallthrough
CT: control target
= control target key end

     0   :  { %v2218_v3 = vmov 0.0   ;;  %s2908_s1 = inlined_call_operand.vmem [shape: f32[128,512], index: 1, kind: input, shape index: {}]   ;;  %s2909_s0 = inlined_call_operand.vmem [shape: f32[8,4096], index: 0, kind: input, shape index: {}]   ;;  %s2910_s2 = inlined_call_operand.vmem [shape: f32[8,1024], index: 2, kind: output, shape index: {}]  }
   0x1   :  { %v20_v0 = vld [vmem:[%s2908_s1 + $0x8] sm:$0xff]  ;;  %v22_v2 = vld [vmem:[%s2908_s1 + $0x18] sm:$0xff]  ;;  %151 = vmatprep.mubr.f32.mxu0 %v2218_v3  ;;  %222 = vmatprep.mubr.f32.mxu1 %v2218_v3  ;;  %v19_v6 = vld [vmem:[%s2908_s1] sm:$0xff] }
   0x2   :  { %v24_v1 = vld [vmem:[%s2908_s1 + $0x28] sm:$0xff]  ;;  %v26_v5 = vld [vmem:[%s2908_s1 + $0x38] sm:$0xff]  ;;  %v23_v7 = vld [vmem:[%s2908_s1 + $0x20] sm:$0xff] }
   0x3   :  { %v2245_v4 = vpack.c.bf16 %v24_v1, %v20_v0  ;;  %v2256_v8 = vpack.c.bf16 %v26_v5, %v22_v2  ;;  %v2258_v9 = vpack.c.bf16 %v23_v7, %v19_v6  ;;  %v21_v10 = vld [vmem:[%s2908_s1 + $0x10] sm:$0xff]  ;;  %v28_v12 = vld [vmem:[%s2908_s1 + $0x48] sm:$0xff]  ;;  %v30_v15 = vld [vmem:[%s2908_s1 + $0x58] sm:$0xff] }
   0x4   :  { %v25_v11 = vld [vmem:[%s2908_s1 + $0x30] sm:$0xff]  ;;  %v32_v14 = vld [vmem:[%s2908_s1 + $0x68] sm:$0xff]  ;;  %v34_v16 = vld [vmem:[%s2908_s1 + $0x78] sm:$0xff] }
   0x5   :  { %1562 = vmatprep.subr.bf16.mxu0 %v2245_v4  ;;  %v2270_v13 = vpack.c.bf16 %v25_v11, %v21_v10  ;;  %1594 = vmatprep.subr.bf16.mxu1 %v2256_v8  ;;  %v2283_v17 = vpack.c.bf16 %v32_v14, %v28_v12  ;;  %v2285_v18 = vpack.c.bf16 %v34_v16, %v30_v15  ;;  %v27_v19 = vld [vmem:[%s2908_s1 + $0x40] sm:$0xff]  ;;  %v29_v21 = vld [vmem:[%s2908_s1 + $0x50] sm:$0xff]  ;;  %v36_v24 = vld [vmem:[%s2908_s1 + $0x88] sm:$0xff] }
   0x6   :  { %1564 = vmatpush1.bf16.msra.mxu0 %v2258_v9  ;;  %v31_v20 = vld [vmem:[%s2908_s1 + $0x60] sm:$0xff]  ;;  %v33_v23 = vld [vmem:[%s2908_s1 + $0x70] sm:$0xff]  ;;  %v40_v25 = vld [vmem:[%s2908_s1 + $0xa8] sm:$0xff] }
   0x7   :  { %1596 = vmatpush1.bf16.msra.mxu1 %v2270_v13  ;;  %v2297_v22 = vpack.c.bf16 %v31_v20, %v27_v19  ;;  %1566 = vmatprep.subr.bf16.mxu0 %v2283_v17  ;;  %v2310_v26 = vpack.c.bf16 %v33_v23, %v29_v21  ;;  %v2312_v27 = vpack.c.bf16 %v40_v25, %v36_v24  ;;  %v38_v28 = vld [vmem:[%s2908_s1 + $0x98] sm:$0xff]  ;;  %v35_v30 = vld [vmem:[%s2908_s1 + $0x80] sm:$0xff]  ;;  %v37_v33 = vld [vmem:[%s2908_s1 + $0x90] sm:$0xff] }
   0x8   :  { %1598 = vmatprep.subr.bf16.mxu1 %v2285_v18  ;;  %v42_v29 = vld [vmem:[%s2908_s1 + $0xb8] sm:$0xff]  ;;  %v39_v32 = vld [vmem:[%s2908_s1 + $0xa0] sm:$0xff]  ;;  %v41_v34 = vld [vmem:[%s2908_s1 + $0xb0] sm:$0xff] }
   0x9   :  { %v2323_v31 = vpack.c.bf16 %v42_v29, %v38_v28  ;;  %v2335_v35 = vpack.c.bf16 %v39_v32, %v35_v30  ;;  %v44_v36 = vld [vmem:[%s2908_s1 + $0xc8] sm:$0xff]  ;;  %v46_v38 = vld [vmem:[%s2908_s1 + $0xd8] sm:$0xff]  ;;  %v2348_v39 = vpack.c.bf16 %v41_v34, %v37_v33  ;;  %v43_v42 = vld [vmem:[%s2908_s1 + $0xc0] sm:$0xff] }
   0xa   :  { %1568 = vmatpush1.bf16.msra.mxu0 %v2297_v22  ;;  %v48_v37 = vld [vmem:[%s2908_s1 + $0xe8] sm:$0xff]  ;;  %v50_v41 = vld [vmem:[%s2908_s1 + $0xf8] sm:$0xff]  ;;  %v47_v43 = vld [vmem:[%s2908_s1 + $0xe0] sm:$0xff] }
   0xb   :  { %1600 = vmatpush1.bf16.msra.mxu1 %v2310_v26  ;;  %1570 = vmatprep.subr.bf16.mxu0 %v2312_v27  ;;  %v2350_v40 = vpack.c.bf16 %v48_v37, %v44_v36  ;;  %v2362_v44 = vpack.c.bf16 %v50_v41, %v46_v38  ;;  %v45_v45 = vld [vmem:[%s2908_s1 + $0xd0] sm:$0xff]  ;;  %v52_v47 = vld [vmem:[%s2908_s1 + $0x108] sm:$0xff]  ;;  %v54_v49 = vld [vmem:[%s2908_s1 + $0x118] sm:$0xff]  ;;  %v2383_v51 = vpack.c.bf16 %v47_v43, %v43_v42 }
   0xc   :  { %1602 = vmatprep.subr.bf16.mxu1 %v2323_v31  ;;  %v49_v46 = vld [vmem:[%s2908_s1 + $0xf0] sm:$0xff]  ;;  %v56_v48 = vld [vmem:[%s2908_s1 + $0x128] sm:$0xff]  ;;  %v58_v50 = vld [vmem:[%s2908_s1 + $0x138] sm:$0xff] }
   0xd   :  { %v2387_v52 = vpack.c.bf16 %v49_v46, %v45_v45  ;;  %v2389_v53 = vpack.c.bf16 %v56_v48, %v52_v47  ;;  %v51_v54 = vld [vmem:[%s2908_s1 + $0x100] sm:$0xff]  ;;  %v53_v56 = vld [vmem:[%s2908_s1 + $0x110] sm:$0xff]  ;;  %v2401_v57 = vpack.c.bf16 %v58_v50, %v54_v49  ;;  %v60_v59 = vld [vmem:[%s2908_s1 + $0x148] sm:$0xff] }
   0xe   :  { %1572 = vmatpush1.bf16.msra.mxu0 %v2335_v35  ;;  %v55_v55 = vld [vmem:[%s2908_s1 + $0x120] sm:$0xff]  ;;  %v57_v58 = vld [vmem:[%s2908_s1 + $0x130] sm:$0xff]  ;;  %v64_v60 = vld [vmem:[%s2908_s1 + $0x168] sm:$0xff] }
   0xf   :  { %1604 = vmatpush1.bf16.msra.mxu1 %v2348_v39  ;;  %1574 = vmatprep.subr.bf16.mxu0 %v2350_v40  ;;  %v62_v61 = vld [vmem:[%s2908_s1 + $0x158] sm:$0xff]  ;;  %v2419_v63 = vpack.c.bf16 %v55_v55, %v51_v54  ;;  %v2423_v0 = vpack.c.bf16 %v57_v58, %v53_v56  ;;  %v2425_v1 = vpack.c.bf16 %v64_v60, %v60_v59  ;;  %v59_v2 = vld [vmem:[%s2908_s1 + $0x140] sm:$0xff]  ;;  %v61_v6 = vld [vmem:[%s2908_s1 + $0x150] sm:$0xff] }
  0x10   :  { %1606 = vmatprep.subr.bf16.mxu1 %v2362_v44  ;;  %v66_v62 = vld [vmem:[%s2908_s1 + $0x178] sm:$0xff]  ;;  %v63_v5 = vld [vmem:[%s2908_s1 + $0x160] sm:$0xff]  ;;  %v65_v10 = vld [vmem:[%s2908_s1 + $0x170] sm:$0xff] }
  0x11   :  { %v2437_v7 = vpack.c.bf16 %v66_v62, %v62_v61  ;;  %v68_v11 = vld [vmem:[%s2908_s1 + $0x188] sm:$0xff]  ;;  %v70_v14 = vld [vmem:[%s2908_s1 + $0x198] sm:$0xff]  ;;  %v2455_v16 = vpack.c.bf16 %v63_v5, %v59_v2  ;;  %v2459_v19 = vpack.c.bf16 %v65_v10, %v61_v6  ;;  %v67_v21 = vld [vmem:[%s2908_s1 + $0x180] sm:$0xff] }
  0x12   :  { %1576 = vmatpush1.bf16.msra.mxu0 %v2383_v51  ;;  %v72_v12 = vld [vmem:[%s2908_s1 + $0x1a8] sm:$0xff]  ;;  %v74_v15 = vld [vmem:[%s2908_s1 + $0x1b8] sm:$0xff]  ;;  %v71_v23 = vld [vmem:[%s2908_s1 + $0x1a0] sm:$0xff] }
  0x13   :  { %1608 = vmatpush1.bf16.msra.mxu1 %v2387_v52  ;;  %1578 = vmatprep.subr.bf16.mxu0 %v2389_v53  ;;  %v2461_v20 = vpack.c.bf16 %v72_v12, %v68_v11  ;;  %v69_v24 = vld [vmem:[%s2908_s1 + $0x190] sm:$0xff]  ;;  %v2473_v25 = vpack.c.bf16 %v74_v15, %v70_v14  ;;  %v76_v29 = vld [vmem:[%s2908_s1 + $0x1c8] sm:$0xff]  ;;  %v78_v32 = vld [vmem:[%s2908_s1 + $0x1d8] sm:$0xff]  ;;  %v2491_v34 = vpack.c.bf16 %v71_v23, %v67_v21 }
  0x14   :  { %1610 = vmatprep.subr.bf16.mxu1 %v2401_v57  ;;  %v73_v28 = vld [vmem:[%s2908_s1 + $0x1b0] sm:$0xff]  ;;  %v80_v30 = vld [vmem:[%s2908_s1 + $0x1e8] sm:$0xff]  ;;  %v82_v33 = vld [vmem:[%s2908_s1 + $0x1f8] sm:$0xff] }
  0x15   :  { %v2495_v36 = vpack.c.bf16 %v73_v28, %v69_v24  ;;  %v2497_v37 = vpack.c.bf16 %v80_v30, %v76_v29  ;;  %v75_v38 = vld [vmem:[%s2908_s1 + $0x1c0] sm:$0xff]  ;;  %v2506_v42 = vpack.c.bf16 %v82_v33, %v78_v32  ;;  %v77_v43 = vld [vmem:[%s2908_s1 + $0x1d0] sm:$0xff]  ;;  %v84_v49 = vld [vmem:[%s2909_s0 + $0x8] sm:$0xff] }
  0x16   :  { %1580 = vmatpush1.bf16.msra.mxu0 %v2419_v63  ;;  %v79_v41 = vld [vmem:[%s2908_s1 + $0x1e0] sm:$0xff]  ;;  %v81_v45 = vld [vmem:[%s2908_s1 + $0x1f0] sm:$0xff]  ;;  %v86_v54 = vld [vmem:[%s2909_s0 + $0x18] sm:$0xff] }
  0x17   :  { %1612 = vmatpush1.bf16.msra.mxu1 %v2423_v0  ;;  %1582 = vmatprep.subr.bf16.mxu0 %v2425_v1  ;;  %v2515_v46 = vpack.c.bf16 %v79_v41, %v75_v38  ;;  %v2519_v47 = vpack.c.bf16 %v81_v45, %v77_v43  ;;  %v83_v48 = vld [vmem:[%s2909_s0] sm:$0xff]  ;;  %v85_v6 = vld [vmem:[%s2909_s0 + $0x10] sm:$0xff] }
  0x18   :  { %1614 = vmatprep.subr.bf16.mxu1 %v2437_v7 }
  0x1a   :  { %1584 = vmatpush1.bf16.msra.mxu0 %v2455_v16 }
  0x1b   :  { %1616 = vmatpush1.bf16.msra.mxu1 %v2459_v19  ;;  %1586 = vmatprep.subr.bf16.mxu0 %v2461_v20 }
  0x1c   :  { %1618 = vmatprep.subr.bf16.mxu1 %v2473_v25 }
  0x1e   :  { %1588 = vmatpush1.bf16.msra.mxu0 %v2491_v34 }
  0x1f   :  { %1620 = vmatpush1.bf16.msra.mxu1 %v2495_v36  ;;  %1590 = vmatprep.subr.bf16.mxu0 %v2497_v37 }
  0x20   :  { %1622 = vmatprep.subr.bf16.mxu1 %v2506_v42 }
  0x22   :  { %1592 = vmatpush1.bf16.msra.mxu0 %v2515_v46 }
  0x23   :  { %1624 = vmatpush1.bf16.msra.mxu1 %v2519_v47  ;;  %1626 = vmatprep.subr.bf16.mxu0 %v2245_v4 }
  0x24   :  { %1658 = vmatprep.subr.bf16.mxu1 %v2256_v8 }
  0x25   :  { %152 = vmatmul.mubr.f32.vlgmr.msra.gmra.mrb[0].mxu0 %v2218_v3 }
  0x26   :  { %223 = vmatmul.mubr.f32.vlgmr.msra.gmra.mrb[0].mxu1 %v2218_v3  ;;  %1628 = vmatpush1.bf16.msra.mxu0 %v2258_v9 }
  0x27   :  { %1660 = vmatpush1.bf16.msra.mxu1 %v2270_v13  ;;  %1630 = vmatprep.subr.bf16.mxu0 %v2283_v17 }
  0x28   :  { %1662 = vmatprep.subr.bf16.mxu1 %v2285_v18  ;;  %331 = vmatprep.mubr.f32.mxu0 %v2218_v3 }
  0x29   :  { %402 = vmatprep.mubr.f32.mxu1 %v2218_v3 }
  0x2a   :  { %1632 = vmatpush1.bf16.msra.mxu0 %v2297_v22 }
  0x2b   :  { %1664 = vmatpush1.bf16.msra.mxu1 %v2310_v26  ;;  %1634 = vmatprep.subr.bf16.mxu0 %v2312_v27 }
  0x2c   :  { %1666 = vmatprep.subr.bf16.mxu1 %v2323_v31 }
  0x2e   :  { %1636 = vmatpush1.bf16.msra.mxu0 %v2335_v35 }
  0x2f   :  { %1668 = vmatpush1.bf16.msra.mxu1 %v2348_v39  ;;  %1638 = vmatprep.subr.bf16.mxu0 %v2350_v40 }
  0x30   :  { %1670 = vmatprep.subr.bf16.mxu1 %v2362_v44 }
  0x32   :  { %1640 = vmatpush1.bf16.msra.mxu0 %v2383_v51 }
  0x33   :  { %1672 = vmatpush1.bf16.msra.mxu1 %v2387_v52  ;;  %1642 = vmatprep.subr.bf16.mxu0 %v2389_v53 }
  0x34   :  { %1674 = vmatprep.subr.bf16.mxu1 %v2401_v57 }
  0x36   :  { %1644 = vmatpush1.bf16.msra.mxu0 %v2419_v63 }
  0x37   :  { %1676 = vmatpush1.bf16.msra.mxu1 %v2423_v0  ;;  %1646 = vmatprep.subr.bf16.mxu0 %v2425_v1 }
  0x38   :  { %1678 = vmatprep.subr.bf16.mxu1 %v2437_v7 }
  0x3a   :  { %1648 = vmatpush1.bf16.msra.mxu0 %v2455_v16 }
  0x3b   :  { %1680 = vmatpush1.bf16.msra.mxu1 %v2459_v19  ;;  %1650 = vmatprep.subr.bf16.mxu0 %v2461_v20 }
  0x3c   :  { %1682 = vmatprep.subr.bf16.mxu1 %v2473_v25 }
  0x3e   :  { %1652 = vmatpush1.bf16.msra.mxu0 %v2491_v34 }
  0x3f   :  { %1684 = vmatpush1.bf16.msra.mxu1 %v2495_v36  ;;  %1654 = vmatprep.subr.bf16.mxu0 %v2497_v37 }
  0x40   :  { %1686 = vmatprep.subr.bf16.mxu1 %v2506_v42 }
  0x42   :  { %1656 = vmatpush1.bf16.msra.mxu0 %v2515_v46 }
  0x43   :  { %1688 = vmatpush1.bf16.msra.mxu1 %v2519_v47  ;;  %1690 = vmatprep.subr.bf16.mxu0 %v2245_v4 }
  0x44   :  { %1722 = vmatprep.subr.bf16.mxu1 %v2256_v8 }
  0xf8   :  { %v153_v50 = vpop.f32.mrb[0].mxu0 }
  0xf9   :  { %v229_v55 = vadd.f32 %v153_v50, %v83_v48  ;;  %v224_v56 = vpop.f32.mrb[0].mxu1  ;;  %v155_v58 = vpop.f32.mrb[1].mxu0  ;;  %v263_v50 = vld [vmem:[%s2909_s0 + $0x20] sm:$0xff] }
  0xfa   :  { %v230_v59 = vadd.f32 %v155_v58, %v84_v49  ;;  %v226_v60 = vpop.f32.mrb[1].mxu1  ;;  %v231_v10 = vadd.f32 %v224_v56, %v85_v6 }
  0xfb   :  { %v1529_v61 = vmul.f32 -1.442695, %v229_v55  ;;  %v232_v62 = vadd.f32 %v226_v60, %v86_v54  ;;  %v264_v54 = vld [vmem:[%s2909_s0 + $0x28] sm:$0xff]  ;;  %v266_v55 = vld [vmem:[%s2909_s0 + $0x38] sm:$0xff] }
  0xfc   :  { %v1530_v2 = vmul.f32 -1.442695, %v230_v59  ;;  %v1531_v11 = vmul.f32 -1.442695, %v231_v10 }
  0xfd   :  { %2074 = vpow2.f32 %v1529_v61  ;;  %v1532_v5 = vmul.f32 -1.442695, %v232_v62 }
  0xfe   :  { %2076 = vpow2.f32 %v1530_v2 }
  0xff   :  { %2078 = vpow2.f32 %v1532_v5 }
 0x100   :  { %2080 = vpow2.f32 %v1531_v11  ;;  %v265_v11 = vld [vmem:[%s2909_s0 + $0x30] sm:$0xff] }
 0x107   :  { %v2075_v12 = vpop.eup %2074 }
 0x108   :  { %v245_v14 = vadd.f32 1.0, %v2075_v12  ;;  %v2077_v15 = vpop.eup %2076 }
 0x109   :  { %v2079_v21 = vpop.eup %2078  ;;  %v246_v23 = vadd.f32 1.0, %v2077_v15 }
 0x10a   :  { %2082 = vrcp.f32 %v245_v14  ;;  %v248_v24 = vadd.f32 1.0, %v2079_v21  ;;  %v2081_v28 = vpop.eup %2080 }
 0x10b   :  { %2084 = vrcp.f32 %v246_v23  ;;  %v247_v38 = vadd.f32 1.0, %v2081_v28 }
 0x10c   :  { %2086 = vrcp.f32 %v248_v24 }
 0x10d   :  { %2088 = vrcp.f32 %v247_v38 }
 0x114   :  { %v2083_v29 = vpop.eup %2082 }
 0x115   :  { %v2085_v30 = vpop.eup %2084  ;;  %v257_v32 = vmul.f32 0.0, %v2083_v29 }
 0x116   :  { %v2087_v33 = vpop.eup %2086 }
 0x117   :  { %v258_v41 = vmul.f32 %v2087_v33, %v2085_v30  ;;  %v2089_v45 = vpop.eup %2088 }
 0x119   :  { %v2574_v43 = vadd.f32 %v258_v41, %v257_v32 }
 0x11b   :  { %2090 = vtanh.f32 %v2574_v43 }
 0x125   :  { %v2091_v48 = vpop.eup %2090 }
 0x126   :  { %v261_v49 = vmul.f32 %v2091_v48, %v2089_v45 }
 0x128   :  { %262 = vst [vmem:[%s2910_s2] sm:$0xff] %v261_v49  ;;  %332 = vmatmul.mubr.f32.vlgmr.msra.gmra.mrb[2].mxu0 %v261_v49  ;;  %403 = vmatmul.mubr.f32.vlgmr.msra.gmra.mrb[2].mxu1 %v261_v49 }
 0x129   :  { %1692 = vmatpush1.bf16.msra.mxu0 %v2258_v9  ;;  %1724 = vmatpush1.bf16.msra.mxu1 %v2270_v13 }
 0x12a   :  { %1694 = vmatprep.subr.bf16.mxu0 %v2283_v17  ;;  %1726 = vmatprep.subr.bf16.mxu1 %v2285_v18 }
 0x12b   :  { %511 = vmatprep.mubr.f32.mxu0 %v2218_v3  ;;  %582 = vmatprep.mubr.f32.mxu1 %v2218_v3 }
 0x12d   :  { %1696 = vmatpush1.bf16.msra.mxu0 %v2297_v22  ;;  %1728 = vmatpush1.bf16.msra.mxu1 %v2310_v26 }
 0x12e   :  { %1698 = vmatprep.subr.bf16.mxu0 %v2312_v27  ;;  %1730 = vmatprep.subr.bf16.mxu1 %v2323_v31 }
 0x131   :  { %1700 = vmatpush1.bf16.msra.mxu0 %v2335_v35  ;;  %1732 = vmatpush1.bf16.msra.mxu1 %v2348_v39 }
 0x132   :  { %1702 = vmatprep.subr.bf16.mxu0 %v2350_v40  ;;  %1734 = vmatprep.subr.bf16.mxu1 %v2362_v44 }
 0x135   :  { %1704 = vmatpush1.bf16.msra.mxu0 %v2383_v51  ;;  %1736 = vmatpush1.bf16.msra.mxu1 %v2387_v52 }
 0x136   :  { %1706 = vmatprep.subr.bf16.mxu0 %v2389_v53  ;;  %1738 = vmatprep.subr.bf16.mxu1 %v2401_v57 }
 0x139   :  { %1708 = vmatpush1.bf16.msra.mxu0 %v2419_v63  ;;  %1740 = vmatpush1.bf16.msra.mxu1 %v2423_v0 }
 0x13a   :  { %1710 = vmatprep.subr.bf16.mxu0 %v2425_v1  ;;  %1742 = vmatprep.subr.bf16.mxu1 %v2437_v7 }
 0x13d   :  { %1712 = vmatpush1.bf16.msra.mxu0 %v2455_v16  ;;  %1744 = vmatpush1.bf16.msra.mxu1 %v2459_v19 }
 0x13e   :  { %1714 = vmatprep.subr.bf16.mxu0 %v2461_v20  ;;  %1746 = vmatprep.subr.bf16.mxu1 %v2473_v25 }
 0x141   :  { %1716 = vmatpush1.bf16.msra.mxu0 %v2491_v34  ;;  %1748 = vmatpush1.bf16.msra.mxu1 %v2495_v36 }
 0x142   :  { %1718 = vmatprep.subr.bf16.mxu0 %v2497_v37  ;;  %1750 = vmatprep.subr.bf16.mxu1 %v2506_v42 }
 0x145   :  { %1720 = vmatpush1.bf16.msra.mxu0 %v2515_v46  ;;  %1752 = vmatpush1.bf16.msra.mxu1 %v2519_v47 }
 0x146   :  { %1754 = vmatprep.subr.bf16.mxu0 %v2245_v4  ;;  %1786 = vmatprep.subr.bf16.mxu1 %v2256_v8 }
 0x1fb   :  { %v333_v56 = vpop.f32.mrb[2].mxu0  ;;  %v404_v58 = vpop.f32.mrb[2].mxu1 }
 0x1fc   :  { %v409_v59 = vadd.f32 %v333_v56, %v263_v50  ;;  %v335_v60 = vpop.f32.mrb[3].mxu0  ;;  %v406_v61 = vpop.f32.mrb[3].mxu1  ;;  %v411_v12 = vadd.f32 %v404_v58, %v265_v11  ;;  %v444_v56 = vld [vmem:[%s2909_s0 + $0x48] sm:$0xff]  ;;  %v446_v58 = vld [vmem:[%s2909_s0 + $0x58] sm:$0xff] }
 0x1fd   :  { %v410_v62 = vadd.f32 %v335_v60, %v264_v54  ;;  %v412_v2 = vadd.f32 %v406_v61, %v266_v55 }
 0x1fe   :  { %v1533_v5 = vmul.f32 -1.442695, %v409_v59  ;;  %v1535_v14 = vmul.f32 -1.442695, %v411_v12 }
 0x1ff   :  { %v1534_v6 = vmul.f32 -1.442695, %v410_v62  ;;  %v1536_v10 = vmul.f32 -1.442695, %v412_v2 }
 0x200   :  { %2092 = vpow2.f32 %v1533_v5 }
 0x201   :  { %2094 = vpow2.f32 %v1534_v6 }
 0x202   :  { %2096 = vpow2.f32 %v1536_v10 }
 0x203   :  { %2098 = vpow2.f32 %v1535_v14  ;;  %v445_v14 = vld [vmem:[%s2909_s0 + $0x50] sm:$0xff] }
 0x20a   :  { %v2093_v15 = vpop.eup %2092 }
 0x20b   :  { %v425_v21 = vadd.f32 1.0, %v2093_v15  ;;  %v2095_v23 = vpop.eup %2094 }
 0x20c   :  { %v2097_v24 = vpop.eup %2096  ;;  %v426_v28 = vadd.f32 1.0, %v2095_v23 }
 0x20d   :  { %2100 = vrcp.f32 %v425_v21  ;;  %v428_v29 = vadd.f32 1.0, %v2097_v24  ;;  %v2099_v30 = vpop.eup %2098 }
 0x20e   :  { %2102 = vrcp.f32 %v426_v28  ;;  %v427_v45 = vadd.f32 1.0, %v2099_v30 }
 0x20f   :  { %2104 = vrcp.f32 %v428_v29 }
 0x210   :  { %2106 = vrcp.f32 %v427_v45 }
 0x217   :  { %v2101_v32 = vpop.eup %2100 }
 0x218   :  { %v2103_v33 = vpop.eup %2102  ;;  %v437_v38 = vmul.f32 %v2101_v32, %v2574_v43  ;;  %v443_v43 = vld [vmem:[%s2909_s0 + $0x40] sm:$0xff] }
 0x219   :  { %v2105_v41 = vpop.eup %2104 }
 0x21a   :  { %v438_v48 = vmul.f32 %v2105_v41, %v2103_v33  ;;  %v2107_v50 = vpop.eup %2106 }
 0x21c   :  { %v2627_v49 = vadd.f32 %v438_v48, %v437_v38 }
 0x21e   :  { %2108 = vtanh.f32 %v2627_v49 }
 0x228   :  { %v2109_v54 = vpop.eup %2108 }
 0x229   :  { %v441_v55 = vmul.f32 %v2109_v54, %v2107_v50 }
 0x22b   :  { %442 = vst [vmem:[%s2910_s2 + $0x8] sm:$0xff] %v441_v55  ;;  %512 = vmatmul.mubr.f32.vlgmr.msra.gmra.mrb[4].mxu0 %v441_v55  ;;  %583 = vmatmul.mubr.f32.vlgmr.msra.gmra.mrb[4].mxu1 %v441_v55 }
 0x22c   :  { %1756 = vmatpush1.bf16.msra.mxu0 %v2258_v9  ;;  %1788 = vmatpush1.bf16.msra.mxu1 %v2270_v13 }
 0x22d   :  { %1758 = vmatprep.subr.bf16.mxu0 %v2283_v17  ;;  %1790 = vmatprep.subr.bf16.mxu1 %v2285_v18 }
 0x22e   :  { %691 = vmatprep.mubr.f32.mxu0 %v2218_v3  ;;  %762 = vmatprep.mubr.f32.mxu1 %v2218_v3 }
 0x230   :  { %1760 = vmatpush1.bf16.msra.mxu0 %v2297_v22  ;;  %1792 = vmatpush1.bf16.msra.mxu1 %v2310_v26 }
 0x231   :  { %1762 = vmatprep.subr.bf16.mxu0 %v2312_v27  ;;  %1794 = vmatprep.subr.bf16.mxu1 %v2323_v31 }
 0x234   :  { %1764 = vmatpush1.bf16.msra.mxu0 %v2335_v35  ;;  %1796 = vmatpush1.bf16.msra.mxu1 %v2348_v39 }
 0x235   :  { %1766 = vmatprep.subr.bf16.mxu0 %v2350_v40  ;;  %1798 = vmatprep.subr.bf16.mxu1 %v2362_v44 }
 0x238   :  { %1768 = vmatpush1.bf16.msra.mxu0 %v2383_v51  ;;  %1800 = vmatpush1.bf16.msra.mxu1 %v2387_v52 }
 0x239   :  { %1770 = vmatprep.subr.bf16.mxu0 %v2389_v53  ;;  %1802 = vmatprep.subr.bf16.mxu1 %v2401_v57 }
 0x23c   :  { %1772 = vmatpush1.bf16.msra.mxu0 %v2419_v63  ;;  %1804 = vmatpush1.bf16.msra.mxu1 %v2423_v0 }
 0x23d   :  { %1774 = vmatprep.subr.bf16.mxu0 %v2425_v1  ;;  %1806 = vmatprep.subr.bf16.mxu1 %v2437_v7 }
 0x240   :  { %1776 = vmatpush1.bf16.msra.mxu0 %v2455_v16  ;;  %1808 = vmatpush1.bf16.msra.mxu1 %v2459_v19 }
 0x241   :  { %1778 = vmatprep.subr.bf16.mxu0 %v2461_v20  ;;  %1810 = vmatprep.subr.bf16.mxu1 %v2473_v25 }
 0x244   :  { %1780 = vmatpush1.bf16.msra.mxu0 %v2491_v34  ;;  %1812 = vmatpush1.bf16.msra.mxu1 %v2495_v36 }
 0x245   :  { %1782 = vmatprep.subr.bf16.mxu0 %v2497_v37  ;;  %1814 = vmatprep.subr.bf16.mxu1 %v2506_v42 }
 0x248   :  { %1784 = vmatpush1.bf16.msra.mxu0 %v2515_v46  ;;  %1816 = vmatpush1.bf16.msra.mxu1 %v2519_v47 }
 0x249   :  { %1818 = vmatprep.subr.bf16.mxu0 %v2245_v4  ;;  %1850 = vmatprep.subr.bf16.mxu1 %v2256_v8 }
 0x2fe   :  { %v513_v59 = vpop.f32.mrb[4].mxu0  ;;  %v584_v60 = vpop.f32.mrb[4].mxu1 }
 0x2ff   :  { %v589_v61 = vadd.f32 %v513_v59, %v443_v43  ;;  %v515_v62 = vpop.f32.mrb[5].mxu0  ;;  %v586_v2 = vpop.f32.mrb[5].mxu1  ;;  %v591_v15 = vadd.f32 %v584_v60, %v445_v14  ;;  %v624_v59 = vld [vmem:[%s2909_s0 + $0x68] sm:$0xff]  ;;  %v626_v60 = vld [vmem:[%s2909_s0 + $0x78] sm:$0xff] }
 0x300   :  { %v590_v5 = vadd.f32 %v515_v62, %v444_v56  ;;  %v592_v6 = vadd.f32 %v586_v2, %v446_v58 }
 0x301   :  { %v1537_v10 = vmul.f32 -1.442695, %v589_v61  ;;  %v1539_v21 = vmul.f32 -1.442695, %v591_v15 }
 0x302   :  { %v1538_v11 = vmul.f32 -1.442695, %v590_v5  ;;  %v1540_v12 = vmul.f32 -1.442695, %v592_v6 }
 0x303   :  { %2110 = vpow2.f32 %v1537_v10 }
 0x304   :  { %2112 = vpow2.f32 %v1538_v11 }
 0x305   :  { %2114 = vpow2.f32 %v1540_v12 }
 0x306   :  { %2116 = vpow2.f32 %v1539_v21  ;;  %v625_v21 = vld [vmem:[%s2909_s0 + $0x70] sm:$0xff] }
 0x30d   :  { %v2111_v23 = vpop.eup %2110 }
 0x30e   :  { %v605_v24 = vadd.f32 1.0, %v2111_v23  ;;  %v2113_v28 = vpop.eup %2112 }
 0x30f   :  { %v2115_v29 = vpop.eup %2114  ;;  %v606_v30 = vadd.f32 1.0, %v2113_v28 }
 0x310   :  { %2118 = vrcp.f32 %v605_v24  ;;  %v608_v32 = vadd.f32 1.0, %v2115_v29  ;;  %v2117_v33 = vpop.eup %2116 }
 0x311   :  { %2120 = vrcp.f32 %v606_v30  ;;  %v607_v50 = vadd.f32 1.0, %v2117_v33 }
 0x312   :  { %2122 = vrcp.f32 %v608_v32 }
 0x313   :  { %2124 = vrcp.f32 %v607_v50 }
 0x31a   :  { %v2119_v38 = vpop.eup %2118 }
 0x31b   :  { %v2121_v41 = vpop.eup %2120  ;;  %v617_v45 = vmul.f32 %v2119_v38, %v2627_v49  ;;  %v623_v49 = vld [vmem:[%s2909_s0 + $0x60] sm:$0xff] }
 0x31c   :  { %v2123_v48 = vpop.eup %2122 }
 0x31d   :  { %v618_v54 = vmul.f32 %v2123_v48, %v2121_v41  ;;  %v2125_v43 = vpop.eup %2124 }
 0x31f   :  { %v2680_v55 = vadd.f32 %v618_v54, %v617_v45 }
 0x321   :  { %2126 = vtanh.f32 %v2680_v55 }
 0x32b   :  { %v2127_v56 = vpop.eup %2126 }
 0x32c   :  { %v621_v58 = vmul.f32 %v2127_v56, %v2125_v43 }
 0x32e   :  { %622 = vst [vmem:[%s2910_s2 + $0x10] sm:$0xff] %v621_v58  ;;  %692 = vmatmul.mubr.f32.vlgmr.msra.gmra.mrb[6].mxu0 %v621_v58  ;;  %763 = vmatmul.mubr.f32.vlgmr.msra.gmra.mrb[6].mxu1 %v621_v58 }
 0x32f   :  { %1820 = vmatpush1.bf16.msra.mxu0 %v2258_v9  ;;  %1852 = vmatpush1.bf16.msra.mxu1 %v2270_v13 }
 0x330   :  { %1822 = vmatprep.subr.bf16.mxu0 %v2283_v17  ;;  %1854 = vmatprep.subr.bf16.mxu1 %v2285_v18 }
 0x331   :  { %871 = vmatprep.mubr.f32.mxu0 %v2218_v3  ;;  %942 = vmatprep.mubr.f32.mxu1 %v2218_v3 }
 0x333   :  { %1824 = vmatpush1.bf16.msra.mxu0 %v2297_v22  ;;  %1856 = vmatpush1.bf16.msra.mxu1 %v2310_v26 }
 0x334   :  { %1826 = vmatprep.subr.bf16.mxu0 %v2312_v27  ;;  %1858 = vmatprep.subr.bf16.mxu1 %v2323_v31 }
 0x337   :  { %1828 = vmatpush1.bf16.msra.mxu0 %v2335_v35  ;;  %1860 = vmatpush1.bf16.msra.mxu1 %v2348_v39 }
 0x338   :  { %1830 = vmatprep.subr.bf16.mxu0 %v2350_v40  ;;  %1862 = vmatprep.subr.bf16.mxu1 %v2362_v44 }
 0x33b   :  { %1832 = vmatpush1.bf16.msra.mxu0 %v2383_v51  ;;  %1864 = vmatpush1.bf16.msra.mxu1 %v2387_v52 }
 0x33c   :  { %1834 = vmatprep.subr.bf16.mxu0 %v2389_v53  ;;  %1866 = vmatprep.subr.bf16.mxu1 %v2401_v57 }
 0x33f   :  { %1836 = vmatpush1.bf16.msra.mxu0 %v2419_v63  ;;  %1868 = vmatpush1.bf16.msra.mxu1 %v2423_v0 }
 0x340   :  { %1838 = vmatprep.subr.bf16.mxu0 %v2425_v1  ;;  %1870 = vmatprep.subr.bf16.mxu1 %v2437_v7 }
 0x343   :  { %1840 = vmatpush1.bf16.msra.mxu0 %v2455_v16  ;;  %1872 = vmatpush1.bf16.msra.mxu1 %v2459_v19 }
 0x344   :  { %1842 = vmatprep.subr.bf16.mxu0 %v2461_v20  ;;  %1874 = vmatprep.subr.bf16.mxu1 %v2473_v25 }
 0x347   :  { %1844 = vmatpush1.bf16.msra.mxu0 %v2491_v34  ;;  %1876 = vmatpush1.bf16.msra.mxu1 %v2495_v36 }
 0x348   :  { %1846 = vmatprep.subr.bf16.mxu0 %v2497_v37  ;;  %1878 = vmatprep.subr.bf16.mxu1 %v2506_v42 }
 0x34b   :  { %1848 = vmatpush1.bf16.msra.mxu0 %v2515_v46  ;;  %1880 = vmatpush1.bf16.msra.mxu1 %v2519_v47 }
 0x34c   :  { %1882 = vmatprep.subr.bf16.mxu0 %v2245_v4  ;;  %1914 = vmatprep.subr.bf16.mxu1 %v2256_v8 }
 0x401   :  { %v693_v61 = vpop.f32.mrb[6].mxu0  ;;  %v764_v62 = vpop.f32.mrb[6].mxu1 }
 0x402   :  { %v769_v2 = vadd.f32 %v693_v61, %v623_v49  ;;  %v695_v5 = vpop.f32.mrb[7].mxu0  ;;  %v766_v6 = vpop.f32.mrb[7].mxu1  ;;  %v771_v23 = vadd.f32 %v764_v62, %v625_v21  ;;  %v804_v61 = vld [vmem:[%s2909_s0 + $0x88] sm:$0xff]  ;;  %v806_v62 = vld [vmem:[%s2909_s0 + $0x98] sm:$0xff] }
 0x403   :  { %v770_v10 = vadd.f32 %v695_v5, %v624_v59  ;;  %v772_v11 = vadd.f32 %v766_v6, %v626_v60 }
 0x404   :  { %v1541_v12 = vmul.f32 -1.442695, %v769_v2  ;;  %v1543_v24 = vmul.f32 -1.442695, %v771_v23 }
 0x405   :  { %v1542_v14 = vmul.f32 -1.442695, %v770_v10  ;;  %v1544_v15 = vmul.f32 -1.442695, %v772_v11 }
 0x406   :  { %2128 = vpow2.f32 %v1541_v12 }
 0x407   :  { %2130 = vpow2.f32 %v1542_v14 }
 0x408   :  { %2132 = vpow2.f32 %v1544_v15 }
 0x409   :  { %2134 = vpow2.f32 %v1543_v24  ;;  %v805_v24 = vld [vmem:[%s2909_s0 + $0x90] sm:$0xff] }
 0x410   :  { %v2129_v28 = vpop.eup %2128 }
 0x411   :  { %v785_v29 = vadd.f32 1.0, %v2129_v28  ;;  %v2131_v30 = vpop.eup %2130 }
 0x412   :  { %v2133_v32 = vpop.eup %2132  ;;  %v786_v33 = vadd.f32 1.0, %v2131_v30 }
 0x413   :  { %2136 = vrcp.f32 %v785_v29  ;;  %v788_v38 = vadd.f32 1.0, %v2133_v32  ;;  %v2135_v41 = vpop.eup %2134 }
 0x414   :  { %2138 = vrcp.f32 %v786_v33  ;;  %v787_v43 = vadd.f32 1.0, %v2135_v41 }
 0x415   :  { %2140 = vrcp.f32 %v788_v38 }
 0x416   :  { %2142 = vrcp.f32 %v787_v43 }
 0x41d   :  { %v2137_v45 = vpop.eup %2136 }
 0x41e   :  { %v2139_v48 = vpop.eup %2138  ;;  %v797_v50 = vmul.f32 %v2137_v45, %v2680_v55  ;;  %v803_v55 = vld [vmem:[%s2909_s0 + $0x80] sm:$0xff] }
 0x41f   :  { %v2141_v54 = vpop.eup %2140 }
 0x420   :  { %v798_v56 = vmul.f32 %v2141_v54, %v2139_v48  ;;  %v2143_v49 = vpop.eup %2142 }
 0x422   :  { %v2733_v58 = vadd.f32 %v798_v56, %v797_v50 }
 0x424   :  { %2144 = vtanh.f32 %v2733_v58 }
 0x42e   :  { %v2145_v59 = vpop.eup %2144 }
 0x42f   :  { %v801_v60 = vmul.f32 %v2145_v59, %v2143_v49 }
 0x431   :  { %802 = vst [vmem:[%s2910_s2 + $0x18] sm:$0xff] %v801_v60  ;;  %872 = vmatmul.mubr.f32.vlgmr.msra.gmra.mrb[8].mxu0 %v801_v60  ;;  %943 = vmatmul.mubr.f32.vlgmr.msra.gmra.mrb[8].mxu1 %v801_v60 }
 0x432   :  { %1884 = vmatpush1.bf16.msra.mxu0 %v2258_v9  ;;  %1916 = vmatpush1.bf16.msra.mxu1 %v2270_v13 }
 0x433   :  { %1886 = vmatprep.subr.bf16.mxu0 %v2283_v17  ;;  %1918 = vmatprep.subr.bf16.mxu1 %v2285_v18 }
 0x434   :  { %1051 = vmatprep.mubr.f32.mxu0 %v2218_v3  ;;  %1122 = vmatprep.mubr.f32.mxu1 %v2218_v3 }
 0x436   :  { %1888 = vmatpush1.bf16.msra.mxu0 %v2297_v22  ;;  %1920 = vmatpush1.bf16.msra.mxu1 %v2310_v26 }
 0x437   :  { %1890 = vmatprep.subr.bf16.mxu0 %v2312_v27  ;;  %1922 = vmatprep.subr.bf16.mxu1 %v2323_v31 }
 0x43a   :  { %1892 = vmatpush1.bf16.msra.mxu0 %v2335_v35  ;;  %1924 = vmatpush1.bf16.msra.mxu1 %v2348_v39 }
 0x43b   :  { %1894 = vmatprep.subr.bf16.mxu0 %v2350_v40  ;;  %1926 = vmatprep.subr.bf16.mxu1 %v2362_v44 }
 0x43e   :  { %1896 = vmatpush1.bf16.msra.mxu0 %v2383_v51  ;;  %1928 = vmatpush1.bf16.msra.mxu1 %v2387_v52 }
 0x43f   :  { %1898 = vmatprep.subr.bf16.mxu0 %v2389_v53  ;;  %1930 = vmatprep.subr.bf16.mxu1 %v2401_v57 }
 0x442   :  { %1900 = vmatpush1.bf16.msra.mxu0 %v2419_v63  ;;  %1932 = vmatpush1.bf16.msra.mxu1 %v2423_v0 }
 0x443   :  { %1902 = vmatprep.subr.bf16.mxu0 %v2425_v1  ;;  %1934 = vmatprep.subr.bf16.mxu1 %v2437_v7 }
 0x446   :  { %1904 = vmatpush1.bf16.msra.mxu0 %v2455_v16  ;;  %1936 = vmatpush1.bf16.msra.mxu1 %v2459_v19 }
 0x447   :  { %1906 = vmatprep.subr.bf16.mxu0 %v2461_v20  ;;  %1938 = vmatprep.subr.bf16.mxu1 %v2473_v25 }
 0x44a   :  { %1908 = vmatpush1.bf16.msra.mxu0 %v2491_v34  ;;  %1940 = vmatpush1.bf16.msra.mxu1 %v2495_v36 }
 0x44b   :  { %1910 = vmatprep.subr.bf16.mxu0 %v2497_v37  ;;  %1942 = vmatprep.subr.bf16.mxu1 %v2506_v42 }
 0x44e   :  { %1912 = vmatpush1.bf16.msra.mxu0 %v2515_v46  ;;  %1944 = vmatpush1.bf16.msra.mxu1 %v2519_v47 }
 0x44f   :  { %1946 = vmatprep.subr.bf16.mxu0 %v2245_v4  ;;  %1978 = vmatprep.subr.bf16.mxu1 %v2256_v8 }
 0x504   :  { %v873_v2 = vpop.f32.mrb[8].mxu0  ;;  %v944_v5 = vpop.f32.mrb[8].mxu1 }
 0x505   :  { %v949_v6 = vadd.f32 %v873_v2, %v803_v55  ;;  %v875_v10 = vpop.f32.mrb[9].mxu0  ;;  %v946_v11 = vpop.f32.mrb[9].mxu1  ;;  %v951_v28 = vadd.f32 %v944_v5, %v805_v24  ;;  %v984_v2 = vld [vmem:[%s2909_s0 + $0xa8] sm:$0xff]  ;;  %v986_v5 = vld [vmem:[%s2909_s0 + $0xb8] sm:$0xff]  ;;  %v985_v24 = vld [vmem:[%s2909_s0 + $0xb0] sm:$0xff] }
 0x506   :  { %v950_v12 = vadd.f32 %v875_v10, %v804_v61  ;;  %v952_v14 = vadd.f32 %v946_v11, %v806_v62 }
 0x507   :  { %v1545_v15 = vmul.f32 -1.442695, %v949_v6  ;;  %v1547_v29 = vmul.f32 -1.442695, %v951_v28 }
 0x508   :  { %v1546_v21 = vmul.f32 -1.442695, %v950_v12  ;;  %v1548_v23 = vmul.f32 -1.442695, %v952_v14 }
 0x509   :  { %2146 = vpow2.f32 %v1545_v15 }
 0x50a   :  { %2148 = vpow2.f32 %v1546_v21 }
 0x50b   :  { %2150 = vpow2.f32 %v1548_v23 }
 0x50c   :  { %2152 = vpow2.f32 %v1547_v29 }
 0x513   :  { %v2147_v30 = vpop.eup %2146 }
 0x514   :  { %v965_v32 = vadd.f32 1.0, %v2147_v30  ;;  %v2149_v33 = vpop.eup %2148 }
 0x515   :  { %v2151_v38 = vpop.eup %2150  ;;  %v966_v41 = vadd.f32 1.0, %v2149_v33 }
 0x516   :  { %2154 = vrcp.f32 %v965_v32  ;;  %v968_v45 = vadd.f32 1.0, %v2151_v38  ;;  %v2153_v48 = vpop.eup %2152 }
 0x517   :  { %2156 = vrcp.f32 %v966_v41  ;;  %v967_v49 = vadd.f32 1.0, %v2153_v48 }
 0x518   :  { %2158 = vrcp.f32 %v968_v45 }
 0x519   :  { %2160 = vrcp.f32 %v967_v49 }
 0x520   :  { %v2155_v50 = vpop.eup %2154 }
 0x521   :  { %v2157_v54 = vpop.eup %2156  ;;  %v977_v43 = vmul.f32 %v2155_v50, %v2733_v58  ;;  %v983_v58 = vld [vmem:[%s2909_s0 + $0xa0] sm:$0xff] }
 0x522   :  { %v2159_v56 = vpop.eup %2158 }
 0x523   :  { %v978_v59 = vmul.f32 %v2159_v56, %v2157_v54  ;;  %v2161_v55 = vpop.eup %2160 }
 0x525   :  { %v2786_v60 = vadd.f32 %v978_v59, %v977_v43 }
 0x527   :  { %2162 = vtanh.f32 %v2786_v60 }
 0x531   :  { %v2163_v61 = vpop.eup %2162 }
 0x532   :  { %v981_v62 = vmul.f32 %v2163_v61, %v2161_v55 }
 0x534   :  { %982 = vst [vmem:[%s2910_s2 + $0x20] sm:$0xff] %v981_v62  ;;  %1052 = vmatmul.mubr.f32.vlgmr.msra.gmra.mrb[10].mxu0 %v981_v62  ;;  %1123 = vmatmul.mubr.f32.vlgmr.msra.gmra.mrb[10].mxu1 %v981_v62 }
 0x535   :  { %1948 = vmatpush1.bf16.msra.mxu0 %v2258_v9  ;;  %1980 = vmatpush1.bf16.msra.mxu1 %v2270_v13 }
 0x536   :  { %1950 = vmatprep.subr.bf16.mxu0 %v2283_v17  ;;  %1982 = vmatprep.subr.bf16.mxu1 %v2285_v18 }
 0x537   :  { %1231 = vmatprep.mubr.f32.mxu0 %v2218_v3  ;;  %1302 = vmatprep.mubr.f32.mxu1 %v2218_v3 }
 0x539   :  { %1952 = vmatpush1.bf16.msra.mxu0 %v2297_v22  ;;  %1984 = vmatpush1.bf16.msra.mxu1 %v2310_v26 }
 0x53a   :  { %1954 = vmatprep.subr.bf16.mxu0 %v2312_v27  ;;  %1986 = vmatprep.subr.bf16.mxu1 %v2323_v31 }
 0x53d   :  { %1956 = vmatpush1.bf16.msra.mxu0 %v2335_v35  ;;  %1988 = vmatpush1.bf16.msra.mxu1 %v2348_v39 }
 0x53e   :  { %1958 = vmatprep.subr.bf16.mxu0 %v2350_v40  ;;  %1990 = vmatprep.subr.bf16.mxu1 %v2362_v44 }
 0x541   :  { %1960 = vmatpush1.bf16.msra.mxu0 %v2383_v51  ;;  %1992 = vmatpush1.bf16.msra.mxu1 %v2387_v52 }
 0x542   :  { %1962 = vmatprep.subr.bf16.mxu0 %v2389_v53  ;;  %1994 = vmatprep.subr.bf16.mxu1 %v2401_v57 }
 0x545   :  { %1964 = vmatpush1.bf16.msra.mxu0 %v2419_v63  ;;  %1996 = vmatpush1.bf16.msra.mxu1 %v2423_v0 }
 0x546   :  { %1966 = vmatprep.subr.bf16.mxu0 %v2425_v1  ;;  %1998 = vmatprep.subr.bf16.mxu1 %v2437_v7 }
 0x549   :  { %1968 = vmatpush1.bf16.msra.mxu0 %v2455_v16  ;;  %2000 = vmatpush1.bf16.msra.mxu1 %v2459_v19 }
 0x54a   :  { %1970 = vmatprep.subr.bf16.mxu0 %v2461_v20  ;;  %2002 = vmatprep.subr.bf16.mxu1 %v2473_v25 }
 0x54d   :  { %1972 = vmatpush1.bf16.msra.mxu0 %v2491_v34  ;;  %2004 = vmatpush1.bf16.msra.mxu1 %v2495_v36 }
 0x54e   :  { %1974 = vmatprep.subr.bf16.mxu0 %v2497_v37  ;;  %2006 = vmatprep.subr.bf16.mxu1 %v2506_v42 }
 0x551   :  { %1976 = vmatpush1.bf16.msra.mxu0 %v2515_v46  ;;  %2008 = vmatpush1.bf16.msra.mxu1 %v2519_v47 }
 0x552   :  { %2010 = vmatprep.subr.bf16.mxu0 %v2245_v4  ;;  %2042 = vmatprep.subr.bf16.mxu1 %v2256_v8 }
 0x607   :  { %v1053_v6 = vpop.f32.mrb[10].mxu0  ;;  %v1124_v10 = vpop.f32.mrb[10].mxu1 }
 0x608   :  { %v1129_v11 = vadd.f32 %v1053_v6, %v983_v58  ;;  %v1055_v12 = vpop.f32.mrb[11].mxu0  ;;  %v1126_v14 = vpop.f32.mrb[11].mxu1  ;;  %v1131_v28 = vadd.f32 %v1124_v10, %v985_v24  ;;  %v1344_v6 = vld [vmem:[%s2909_s0 + $0xe8] sm:$0xff]  ;;  %v1346_v10 = vld [vmem:[%s2909_s0 + $0xf8] sm:$0xff] }
 0x609   :  { %v1130_v4 = vadd.f32 %v1055_v12, %v984_v2  ;;  %v1132_v15 = vadd.f32 %v1126_v14, %v986_v5  ;;  %v1343_v5 = vld [vmem:[%s2909_s0 + $0xe0] sm:$0xff] }
 0x60a   :  { %v1549_v8 = vmul.f32 -1.442695, %v1129_v11  ;;  %v1551_v29 = vmul.f32 -1.442695, %v1131_v28 }
 0x60b   :  { %v1550_v21 = vmul.f32 -1.442695, %v1130_v4  ;;  %v1552_v23 = vmul.f32 -1.442695, %v1132_v15 }
 0x60c   :  { %2164 = vpow2.f32 %v1549_v8 }
 0x60d   :  { %2166 = vpow2.f32 %v1550_v21 }
 0x60e   :  { %2168 = vpow2.f32 %v1552_v23 }
 0x60f   :  { %2170 = vpow2.f32 %v1551_v29  ;;  %v1345_v29 = vld [vmem:[%s2909_s0 + $0xf0] sm:$0xff] }
 0x616   :  { %v2165_v30 = vpop.eup %2164 }
 0x617   :  { %v1145_v32 = vadd.f32 1.0, %v2165_v30  ;;  %v2167_v33 = vpop.eup %2166 }
 0x618   :  { %v2169_v38 = vpop.eup %2168  ;;  %v1146_v41 = vadd.f32 1.0, %v2167_v33 }
 0x619   :  { %2172 = vrcp.f32 %v1145_v32  ;;  %v1148_v45 = vadd.f32 1.0, %v2169_v38  ;;  %v2171_v48 = vpop.eup %2170 }
 0x61a   :  { %2174 = vrcp.f32 %v1146_v41  ;;  %v1147_v49 = vadd.f32 1.0, %v2171_v48 }
 0x61b   :  { %2176 = vrcp.f32 %v1148_v45 }
 0x61c   :  { %2178 = vrcp.f32 %v1147_v49 }
 0x623   :  { %v2173_v50 = vpop.eup %2172 }
 0x624   :  { %v2175_v54 = vpop.eup %2174  ;;  %v1157_v43 = vmul.f32 %v2173_v50, %v2786_v60 }
 0x625   :  { %v2177_v56 = vpop.eup %2176 }
 0x626   :  { %v1158_v59 = vmul.f32 %v2177_v56, %v2175_v54  ;;  %v2179_v61 = vpop.eup %2178 }
 0x628   :  { %v2839_v55 = vadd.f32 %v1158_v59, %v1157_v43 }
 0x62a   :  { %2180 = vtanh.f32 %v2839_v55 }
 0x634   :  { %v2181_v62 = vpop.eup %2180 }
 0x635   :  { %v1161_v58 = vmul.f32 %v2181_v62, %v2179_v61 }
 0x637   :  { %1162 = vst [vmem:[%s2910_s2 + $0x28] sm:$0xff] %v1161_v58  ;;  %1232 = vmatmul.mubr.f32.vlgmr.msra.gmra.mrb[12].mxu0 %v1161_v58  ;;  %1303 = vmatmul.mubr.f32.vlgmr.msra.gmra.mrb[12].mxu1 %v1161_v58 }
 0x638   :  { %2012 = vmatpush1.bf16.msra.mxu0 %v2258_v9  ;;  %2044 = vmatpush1.bf16.msra.mxu1 %v2270_v13  ;;  %v1164_v9 = vld [vmem:[%s2909_s0 + $0xc8] sm:$0xff]  ;;  %v1166_v13 = vld [vmem:[%s2909_s0 + $0xd8] sm:$0xff] }
 0x639   :  { %2014 = vmatprep.subr.bf16.mxu0 %v2283_v17  ;;  %2046 = vmatprep.subr.bf16.mxu1 %v2285_v18 }
 0x63a   :  { %1411 = vmatprep.mubr.f32.mxu0 %v2218_v3  ;;  %1482 = vmatprep.mubr.f32.mxu1 %v2218_v3  ;;  %v1163_v3 = vld [vmem:[%s2909_s0 + $0xc0] sm:$0xff] }
 0x63c   :  { %2016 = vmatpush1.bf16.msra.mxu0 %v2297_v22  ;;  %2048 = vmatpush1.bf16.msra.mxu1 %v2310_v26 }
 0x63d   :  { %2018 = vmatprep.subr.bf16.mxu0 %v2312_v27  ;;  %2050 = vmatprep.subr.bf16.mxu1 %v2323_v31 }
 0x640   :  { %2020 = vmatpush1.bf16.msra.mxu0 %v2335_v35  ;;  %2052 = vmatpush1.bf16.msra.mxu1 %v2348_v39 }
 0x641   :  { %2022 = vmatprep.subr.bf16.mxu0 %v2350_v40  ;;  %2054 = vmatprep.subr.bf16.mxu1 %v2362_v44 }
 0x644   :  { %2024 = vmatpush1.bf16.msra.mxu0 %v2383_v51  ;;  %2056 = vmatpush1.bf16.msra.mxu1 %v2387_v52  ;;  %v1165_v51 = vld [vmem:[%s2909_s0 + $0xd0] sm:$0xff] }
 0x645   :  { %2026 = vmatprep.subr.bf16.mxu0 %v2389_v53  ;;  %2058 = vmatprep.subr.bf16.mxu1 %v2401_v57 }
 0x648   :  { %2028 = vmatpush1.bf16.msra.mxu0 %v2419_v63  ;;  %2060 = vmatpush1.bf16.msra.mxu1 %v2423_v0 }
 0x649   :  { %2030 = vmatprep.subr.bf16.mxu0 %v2425_v1  ;;  %2062 = vmatprep.subr.bf16.mxu1 %v2437_v7 }
 0x64c   :  { %2032 = vmatpush1.bf16.msra.mxu0 %v2455_v16  ;;  %2064 = vmatpush1.bf16.msra.mxu1 %v2459_v19 }
 0x64d   :  { %2034 = vmatprep.subr.bf16.mxu0 %v2461_v20  ;;  %2066 = vmatprep.subr.bf16.mxu1 %v2473_v25 }
 0x650   :  { %2036 = vmatpush1.bf16.msra.mxu0 %v2491_v34  ;;  %2068 = vmatpush1.bf16.msra.mxu1 %v2495_v36 }
 0x651   :  { %2038 = vmatprep.subr.bf16.mxu0 %v2497_v37  ;;  %2070 = vmatprep.subr.bf16.mxu1 %v2506_v42 }
 0x654   :  { %2040 = vmatpush1.bf16.msra.mxu0 %v2515_v46  ;;  %2072 = vmatpush1.bf16.msra.mxu1 %v2519_v47 }
 0x70a   :  { %v1233_v17 = vpop.f32.mrb[12].mxu0  ;;  %v1304_v18 = vpop.f32.mrb[12].mxu1 }
 0x70b   :  { %v1309_v22 = vadd.f32 %v1233_v17, %v1163_v3  ;;  %v1235_v26 = vpop.f32.mrb[13].mxu0  ;;  %v1306_v27 = vpop.f32.mrb[13].mxu1  ;;  %v1311_v52 = vadd.f32 %v1304_v18, %v1165_v51 }
 0x70c   :  { %v1310_v31 = vadd.f32 %v1235_v26, %v1164_v9  ;;  %v1312_v35 = vadd.f32 %v1306_v27, %v1166_v13 }
 0x70d   :  { %v1553_v39 = vmul.f32 -1.442695, %v1309_v22  ;;  %v1555_v53 = vmul.f32 -1.442695, %v1311_v52 }
 0x70e   :  { %v1554_v40 = vmul.f32 -1.442695, %v1310_v31  ;;  %v1556_v44 = vmul.f32 -1.442695, %v1312_v35 }
 0x70f   :  { %2182 = vpow2.f32 %v1553_v39 }
 0x710   :  { %2184 = vpow2.f32 %v1554_v40 }
 0x711   :  { %2186 = vpow2.f32 %v1556_v44 }
 0x712   :  { %2188 = vpow2.f32 %v1555_v53 }
 0x719   :  { %v2183_v57 = vpop.eup %2182 }
 0x71a   :  { %v1325_v63 = vadd.f32 1.0, %v2183_v57  ;;  %v2185_v0 = vpop.eup %2184 }
 0x71b   :  { %v2187_v1 = vpop.eup %2186  ;;  %v1326_v7 = vadd.f32 1.0, %v2185_v0 }
 0x71c   :  { %2190 = vrcp.f32 %v1325_v63  ;;  %v1328_v16 = vadd.f32 1.0, %v2187_v1  ;;  %v2189_v19 = vpop.eup %2188 }
 0x71d   :  { %2192 = vrcp.f32 %v1326_v7  ;;  %v1327_v37 = vadd.f32 1.0, %v2189_v19 }
 0x71e   :  { %2194 = vrcp.f32 %v1328_v16 }
 0x71f   :  { %2196 = vrcp.f32 %v1327_v37 }
 0x726   :  { %v2191_v20 = vpop.eup %2190 }
 0x727   :  { %v2193_v25 = vpop.eup %2192  ;;  %v1337_v34 = vmul.f32 %v2191_v20, %v2839_v55 }
 0x728   :  { %v2195_v36 = vpop.eup %2194 }
 0x729   :  { %v1338_v42 = vmul.f32 %v2195_v36, %v2193_v25  ;;  %v2197_v47 = vpop.eup %2196 }
 0x72b   :  { %v1339_v46 = vadd.f32 %v1338_v42, %v1337_v34 }
 0x72d   :  { %2198 = vtanh.f32 %v1339_v46 }
 0x737   :  { %v2199_v60 = vpop.eup %2198 }
 0x738   :  { %v1341_v2 = vmul.f32 %v2199_v60, %v2197_v47 }
 0x73a   :  { %1342 = vst [vmem:[%s2910_s2 + $0x30] sm:$0xff] %v1341_v2  ;;  %1412 = vmatmul.mubr.f32.vlgmr.msra.gmra.mrb[14].mxu0 %v1341_v2  ;;  %1483 = vmatmul.mubr.f32.vlgmr.msra.gmra.mrb[14].mxu1 %v1341_v2 }
 0x80d   :  { %v1413_v11 = vpop.f32.mrb[14].mxu0  ;;  %v1484_v12 = vpop.f32.mrb[14].mxu1 }
 0x80e   :  { %v1489_v14 = vadd.f32 %v1413_v11, %v1343_v5  ;;  %v1415_v4 = vpop.f32.mrb[15].mxu0  ;;  %v1486_v15 = vpop.f32.mrb[15].mxu1  ;;  %v1491_v30 = vadd.f32 %v1484_v12, %v1345_v29 }
 0x80f   :  { %v1490_v8 = vadd.f32 %v1415_v4, %v1344_v6  ;;  %v1492_v21 = vadd.f32 %v1486_v15, %v1346_v10 }
 0x810   :  { %v1557_v23 = vmul.f32 -1.442695, %v1489_v14  ;;  %v1559_v32 = vmul.f32 -1.442695, %v1491_v30 }
 0x811   :  { %v1558_v24 = vmul.f32 -1.442695, %v1490_v8  ;;  %v1560_v28 = vmul.f32 -1.442695, %v1492_v21 }
 0x812   :  { %2200 = vpow2.f32 %v1557_v23 }
 0x813   :  { %2202 = vpow2.f32 %v1558_v24 }
 0x814   :  { %2204 = vpow2.f32 %v1560_v28 }
 0x815   :  { %2206 = vpow2.f32 %v1559_v32 }
 0x81c   :  { %v2201_v33 = vpop.eup %2200 }
 0x81d   :  { %v1505_v38 = vadd.f32 1.0, %v2201_v33  ;;  %v2203_v41 = vpop.eup %2202 }
 0x81e   :  { %v2205_v45 = vpop.eup %2204  ;;  %v1506_v48 = vadd.f32 1.0, %v2203_v41 }
 0x81f   :  { %2208 = vrcp.f32 %v1505_v38  ;;  %v1508_v50 = vadd.f32 1.0, %v2205_v45  ;;  %v2207_v54 = vpop.eup %2206 }
 0x820   :  { %2210 = vrcp.f32 %v1506_v48  ;;  %v1507_v55 = vadd.f32 1.0, %v2207_v54 }
 0x821   :  { %2212 = vrcp.f32 %v1508_v50 }
 0x822   :  { %2214 = vrcp.f32 %v1507_v55 }
 0x829   :  { %v2209_v43 = vpop.eup %2208 }
 0x82a   :  { %v2211_v56 = vpop.eup %2210  ;;  %v1517_v49 = vmul.f32 %v2209_v43, %v1339_v46 }
 0x82b   :  { %v2213_v59 = vpop.eup %2212 }
 0x82c   :  { %v1518_v61 = vmul.f32 %v2213_v59, %v2211_v56  ;;  %v2215_v58 = vpop.eup %2214 }
 0x82e   :  { %v1519_v62 = vadd.f32 %v1518_v61, %v1517_v49 }
 0x830   :  { %2216 = vtanh.f32 %v1519_v62 }
 0x83a   :  { %v2217_v3 = vpop.eup %2216 }
 0x83b   :  { %v1521_v9 = vmul.f32 %v2217_v3, %v2215_v58 }
 0x83d   :  { %1522 = vst [vmem:[%s2910_s2 + $0x38] sm:$0xff] %v1521_v9 }

</bundles_post_ra>
